<compile_context>
chip_gen: v7x
topology: tpu7x:2x2x1
jax: 0.10.0
libtpu: 0.0.40
codegen_flags: <defaults>
</compile_context>

<pallas_src>
import functools

import jax
import jax.numpy as jnp
from jax import lax
from jax.experimental import pallas as pl
from jax.experimental.pallas import tpu as pltpu


def _round_up(x, m):
    return (x + m - 1) // m * m


# ---------------------------------------------------------------------------
# Phase R: fused GRU recurrence (gi computed per T-chunk, h carried in scratch)
# ---------------------------------------------------------------------------
def gru_recurrence_kernel(x_ref, h0_ref, wih_ref, whh_ref, bpre_ref, bhn_ref,
                          hs_ref, hfin_ref, h_sc, gi_sc, *, t_total):
    t = pl.program_id(1)                       # T-chunk index ("arbitrary")
    Tc, bc, Hp = hs_ref.shape

    @pl.when(t == 0)
    def _():                                   # (re)load h0 per batch chunk
        h_sc[...] = h0_ref[...]

    wih = wih_ref[...]                         # (Hp, 3Hp)  r|z|n fused, bf16
    whh = whh_ref[...]                         # (Hp, 3Hp)
    b_pre = bpre_ref[...]                      # (1, 3Hp)   folded biases, f32
    # Hoisted broadcast (JAX does not CSE broadcast_in_dim inside the unroll).
    b_hn_b = jnp.broadcast_to(bhn_ref[...], (bc, Hp))

    # Fused input-gate matmul for the whole chunk: one MXU call, no gi in HBM.
    x_chunk = x_ref[...].reshape(Tc * bc, Hp)
    gi_sc[...] = (jnp.dot(x_chunk, wih, preferred_element_type=jnp.float32)
                  + b_pre).reshape(Tc, bc, 3 * Hp)

    needs_mask = (t_total % Tc) != 0           # static: only if T was padded

    def step(i, h):                            # h carried in f32
        gi_t = gi_sc[i]                        # (bc, 3Hp) f32
        gh = jnp.dot(h.astype(whh.dtype), whh,
                     preferred_element_type=jnp.float32)          # (bc, 3Hp)
        r = jax.nn.sigmoid(gi_t[:, :Hp] + gh[:, :Hp])
        z = jax.nn.sigmoid(gi_t[:, Hp:2 * Hp] + gh[:, Hp:2 * Hp])
        n = jnp.tanh(gi_t[:, 2 * Hp:] + r * (gh[:, 2 * Hp:] + b_hn_b))
        h_new = (1.0 - z) * n + z * h
        if needs_mask:                         # keep h frozen on padded steps
            h_new = jnp.where(t * Tc + i < t_total, h_new, h)
        hs_ref[i] = h_new.astype(hs_ref.dtype)
        return h_new

    # Bounded unroll: Tc is small (default 8), not the full sequence length.
    h_out = lax.fori_loop(0, Tc, step, h_sc[...], unroll=True)
    h_sc[...] = h_out
    hfin_ref[...] = h_out                      # resident block; last t wins


# ---------------------------------------------------------------------------
# Phase S: per-row online max / log-sum-exp over V tiles (reduction axis last)
# ---------------------------------------------------------------------------
def logits_stats_kernel(h_ref, w_ref, b_ref, denom_ref, m_sc, l_sc):
    j = pl.program_id(1)

    @pl.when(j == 0)
    def _():
        m_sc[...] = jnp.full(m_sc.shape, -jnp.inf, m_sc.dtype)
        l_sc[...] = jnp.zeros(l_sc.shape, l_sc.dtype)

    logits = (jnp.dot(h_ref[...], w_ref[...], preferred_element_type=jnp.float32)
              + b_ref[...])                                        # (rt, tv)
    m_new = jnp.maximum(m_sc[...], jnp.max(logits, axis=-1, keepdims=True))
    l_sc[...] = (jnp.exp(m_sc[...] - m_new) * l_sc[...]
                 + jnp.sum(jnp.exp(logits - m_new), axis=-1, keepdims=True))
    m_sc[...] = m_new

    @pl.when(j == pl.num_programs(1) - 1)
    def _():
        denom_ref[...] = m_sc[...] + jnp.log(l_sc[...])


# ---------------------------------------------------------------------------
# Phase P: projection + log_softmax normalization (fully parallel, lane-dense)
# ---------------------------------------------------------------------------
def proj_logsoftmax_kernel(h_ref, w_ref, b_ref, denom_ref, out_ref):
    logits = (jnp.dot(h_ref[...], w_ref[...], preferred_element_type=jnp.float32)
              + b_ref[...])
    out_ref[...] = logits - denom_ref[...]


# ---------------------------------------------------------------------------
# Wrapper (JAX glue: embedding gather, weight re-layout/padding, final slices)
# ---------------------------------------------------------------------------
def decoder_forward(encoder_outputs, encoder_hidden, targets, params, *,
                    compute_dtype=jnp.bfloat16, time_chunk=8,
                    batch_chunk=64, row_tile=256, vocab_tile=256):
    """Teacher-forcing forward of DecoderRNN (GRU, n_layers=1, no attention).

    encoder_outputs : (B, S, H)  -- unused (no attention), kept for fidelity
    encoder_hidden  : (1, B, H)
    targets         : (B, max_len) int32
    returns (seq_probs (B, T, V), seq_preds=[], final_hidden (1, B, H))
    """
    del encoder_outputs
    emb_table = params["embedding"]                # (V, H)
    wih, whh = params["wih"], params["whh"]        # (3, H, H): x @ wih[g]
    bih, bhh = params["bih"], params["bhh"]        # (3, 1, H)
    wout, bout = params["wout"], params["bout"]    # (H, V), (1, V)

    H = wih.shape[1]
    V = wout.shape[1]
    f32 = jnp.float32

    decoder_input = targets[:, :-1]                # (B, T)
    B, T = decoder_input.shape

    # ---- padded, lane/sublane/MXU-friendly layout -------------------------
    Hp = _round_up(H, 128)                              # lane-aligned gates
    sub = 8 * (4 // jnp.dtype(compute_dtype).itemsize)  # sublane granularity
    Bp = _round_up(B, sub)
    bc = min(Bp, batch_chunk)                           # "parallel" B chunks
    Bp = _round_up(Bp, bc)
    Tc = time_chunk
    Tp = _round_up(T, Tc)
    nb, nt = Bp // bc, Tp // Tc

    rt = row_tile
    tv = vocab_tile
    Vp = _round_up(V, tv)

    def pad2(a, r, c):
        return jnp.pad(a, ((0, r - a.shape[0]), (0, c - a.shape[1])))

    # One-time weight re-layout (constant-foldable XLA glue).
    wih_cat = jnp.concatenate([pad2(wih[g], Hp, Hp) for g in range(3)],
                              axis=1).astype(compute_dtype)          # (Hp,3Hp)
    whh_cat = jnp.concatenate([pad2(whh[g], Hp, Hp) for g in range(3)],
                              axis=1).astype(compute_dtype)          # (Hp,3Hp)
    # Fold b_ir+b_hr / b_iz+b_hz; b_hn must stay inside r * (.) in the kernel.
    b_pre = jnp.concatenate([pad2(bih[0] + bhh[0], 1, Hp),
                             pad2(bih[1] + bhh[1], 1, Hp),
                             pad2(bih[2], 1, Hp)], axis=1).astype(f32)
    b_hn = pad2(bhh[2], 1, Hp).astype(f32)                            # (1,Hp)

    wout_p = pad2(wout, Hp, Vp).astype(compute_dtype)                 # (Hp,Vp)
    # Padded vocab columns get a huge negative bias so they never win max /
    # contribute to sum-exp (finite, so no inf-inf NaNs).
    bout_p = jnp.pad(bout.astype(f32), ((0, 0), (0, Vp - V)),
                     constant_values=-1e30)                           # (1,Vp)

    # Embedding gather + time-major, padded, compute-dtype activations.
    embedded = emb_table[decoder_input]                               # (B,T,H)
    x_tm = jnp.transpose(embedded, (1, 0, 2))                         # (T,B,H)
    x_tm = jnp.pad(x_tm, ((0, Tp - T), (0, Bp - B), (0, Hp - H)))
    x_tm = x_tm.astype(compute_dtype)

    h0 = jnp.pad(encoder_hidden[0], ((0, Bp - B), (0, Hp - H))).astype(f32)

    # ---- phase R: recurrence ----------------------------------------------
    hs, h_fin = pl.pallas_call(
        functools.partial(gru_recurrence_kernel, t_total=T),
        out_shape=(jax.ShapeDtypeStruct((Tp, Bp, Hp), compute_dtype),
                   jax.ShapeDtypeStruct((Bp, Hp), f32)),
        grid_spec=pltpu.PrefetchScalarGridSpec(
            num_scalar_prefetch=0,
            grid=(nb, nt),
            in_specs=[
                pl.BlockSpec((Tc, bc, Hp), lambda b, t: (t, b, 0)),   # x chunk
                pl.BlockSpec((bc, Hp), lambda b, t: (b, 0)),          # h0
                pl.BlockSpec((Hp, 3 * Hp), lambda b, t: (0, 0)),      # W_ih cat
                pl.BlockSpec((Hp, 3 * Hp), lambda b, t: (0, 0)),      # W_hh cat
                pl.BlockSpec((1, 3 * Hp), lambda b, t: (0, 0)),       # b folded
                pl.BlockSpec((1, Hp), lambda b, t: (0, 0)),           # b_hn
            ],
            out_specs=[
                pl.BlockSpec((Tc, bc, Hp), lambda b, t: (t, b, 0)),   # h stack
                pl.BlockSpec((bc, Hp), lambda b, t: (b, 0)),          # final h
            ],
            scratch_shapes=[
                pltpu.VMEM((bc, Hp), f32),              # carried hidden (f32)
                pltpu.VMEM((Tc, bc, 3 * Hp), f32),      # per-chunk input gates
            ]),
        compiler_params=pltpu.CompilerParams(
            dimension_semantics=("parallel", "arbitrary"),
            vmem_limit_bytes=32 * 1024 * 1024),
    )(x_tm, h0, wih_cat, whh_cat, b_pre, b_hn)

    # ---- phase S/P: tiled output projection + stable log_softmax ----------
    TB = Tp * Bp
    TBr = _round_up(TB, rt)
    hs_rows = hs.reshape(TB, Hp)
    if TBr != TB:
        hs_rows = jnp.pad(hs_rows, ((0, TBr - TB), (0, 0)))
    nrow, nv = TBr // rt, Vp // tv

    denom = pl.pallas_call(
        logits_stats_kernel,
        out_shape=jax.ShapeDtypeStruct((TBr, 1), f32),
        grid_spec=pltpu.PrefetchScalarGridSpec(
            num_scalar_prefetch=0,
            grid=(nrow, nv),
            in_specs=[
                pl.BlockSpec((rt, Hp), lambda i, j: (i, 0)),      # h rows
                pl.BlockSpec((Hp, tv), lambda i, j: (0, j)),      # W_out tile
                pl.BlockSpec((1, tv), lambda i, j: (0, j)),       # b_out tile
            ],
            out_specs=pl.BlockSpec((rt, 1), lambda i, j: (i, 0)),
            scratch_shapes=[pltpu.VMEM((rt, 1), f32),             # running max
                            pltpu.VMEM((rt, 1), f32)]),           # running sum
        compiler_params=pltpu.CompilerParams(
            dimension_semantics=("parallel", "arbitrary"),
            vmem_limit_bytes=32 * 1024 * 1024),
    )(hs_rows, wout_p, bout_p)

    logp_rows = pl.pallas_call(
        proj_logsoftmax_kernel,
        out_shape=jax.ShapeDtypeStruct((TBr, Vp), f32),
        grid_spec=pltpu.PrefetchScalarGridSpec(
            num_scalar_prefetch=0,
            grid=(nrow, nv),
            in_specs=[
                pl.BlockSpec((rt, Hp), lambda i, j: (i, 0)),      # h rows
                pl.BlockSpec((Hp, tv), lambda i, j: (0, j)),      # W_out tile
                pl.BlockSpec((1, tv), lambda i, j: (0, j)),       # b_out tile
                pl.BlockSpec((rt, 1), lambda i, j: (i, 0)),       # m + log(l)
            ],
            out_specs=pl.BlockSpec((rt, tv), lambda i, j: (i, j)),
        ),
        compiler_params=pltpu.CompilerParams(
            dimension_semantics=("parallel", "parallel"),
            vmem_limit_bytes=32 * 1024 * 1024),
    )(hs_rows, wout_p, bout_p, denom)

    logp = logp_rows[:TB].reshape(Tp, Bp, Vp)[:T, :B, :V]
    seq_probs = jnp.transpose(logp, (1, 0, 2))           # (B, T, V)
    seq_preds = []   # teacher-forcing branch of the PyTorch module returns []
    h_final = h_fin[:B, :H][None]                        # (1, B, H)
    return seq_probs, seq_preds, h_final


# ---------------------------------------------------------------------------
# Pure-JAX reference (same math as torch GRU + Linear + log_softmax)
# ---------------------------------------------------------------------------
def reference_forward(encoder_hidden, targets, params):
    emb_table = params["embedding"]
    wih, whh = params["wih"], params["whh"]
    bih, bhh = params["bih"], params["bhh"]
    wout, bout = params["wout"], params["bout"]

    x = emb_table[targets[:, :-1]]                # (B, T, H)
    x_tm = jnp.transpose(x, (1, 0, 2))            # (T, B, H)
    h0 = encoder_hidden[0]

    def step(h, xt):
        r = jax.nn.sigmoid(xt @ wih[0] + bih[0] + h @ whh[0] + bhh[0])
        z = jax.nn.sigmoid(xt @ wih[1] + bih[1] + h @ whh[1] + bhh[1])
        n = jnp.tanh(xt @ wih[2] + bih[2] + r * (h @ whh[2] + bhh[2]))
        h_new = (1.0 - z) * n + z * h
        return h_new, h_new

    h_last, hs = lax.scan(step, h0, x_tm)         # hs: (T, B, H)
    logits = hs @ wout + bout                     # (T, B, V)
    logp = jax.nn.log_softmax(logits, axis=-1)
    return jnp.transpose(logp, (1, 0, 2)), h_last[None]


if __name__ == "__main__":
    B, H, V, max_len = 2, 32, 128, 9
    T = max_len - 1
    S = 8   # encoder seq len (unused, no attention)

    key = jax.random.PRNGKey(0)
    ks = jax.random.split(key, 10)
    scale = float(1.0 / jnp.sqrt(H))

    params = {
        "embedding": jax.random.uniform(ks[0], (V, H), jnp.float32, -scale, scale),
        "wih":       jax.random.uniform(ks[1], (3, H, H), jnp.float32, -scale, scale),
        "whh":       jax.random.uniform(ks[2], (3, H, H), jnp.float32, -scale, scale),
        "bih":       jax.random.uniform(ks[3], (3, 1, H), jnp.float32, -scale, scale),
        "bhh":       jax.random.uniform(ks[4], (3, 1, H), jnp.float32, -scale, scale),
        "wout":      jax.random.uniform(ks[5], (H, V), jnp.float32, -scale, scale),
        "bout":      jax.random.uniform(ks[6], (1, V), jnp.float32, -scale, scale),
    }

    encoder_outputs = jax.random.normal(ks[7], (B, S, H), jnp.float32)
    encoder_hidden = jax.random.normal(ks[8], (1, B, H), jnp.float32)
    targets = jax.random.randint(ks[9], (B, max_len), 0, V, dtype=jnp.int32)

    ref_probs, ref_h = reference_forward(encoder_hidden, targets, params)

    # f32 matmul path: tight structural-correctness check vs the reference.
    p32, _, h32 = decoder_forward(encoder_outputs, encoder_hidden, targets,
                                  params, compute_dtype=jnp.float32)
    jax.block_until_ready(p32)
    jax.block_until_ready(h32)
    assert p32.shape == (B, T, V) and h32.shape == (1, B, H)
    assert jnp.allclose(p32, ref_probs, atol=1e-3, rtol=1e-3)
    assert jnp.allclose(h32, ref_h, atol=1e-3, rtol=1e-3)

    # bf16 matmul path (default / performance config): loose drift check.
    p16, preds16, h16 = decoder_forward(encoder_outputs, encoder_hidden,
                                        targets, params)
    jax.block_until_ready(p16)
    jax.block_until_ready(h16)
    assert p16.shape == (B, T, V) and h16.shape == (1, B, H)
    assert preds16 == []
    assert jnp.allclose(p16, ref_probs, atol=1e-1, rtol=1e-1)
    assert jnp.allclose(h16, ref_h, atol=1e-1, rtol=1e-1)

    print("KERNEL_OK")
</pallas_src>

<mosaic_0001>
module attributes {stable_mosaic.version = 11 : i64} {
  func.func @gru_recurrence_kernel(%arg0: i32, %arg1: i32, %arg2: memref<8x8x128xf32, #tpu.memory_space<vmem>>, %arg3: memref<8x128xf32, #tpu.memory_space<vmem>>, %arg4: memref<128x384xf32, #tpu.memory_space<vmem>>, %arg5: memref<128x384xf32, #tpu.memory_space<vmem>>, %arg6: memref<1x384xf32, #tpu.memory_space<vmem>>, %arg7: memref<1x128xf32, #tpu.memory_space<vmem>>, %arg8: memref<8x8x128xf32, #tpu.memory_space<vmem>>, %arg9: memref<8x128xf32, #tpu.memory_space<vmem>>, %arg10: memref<8x128xf32, #tpu.memory_space<vmem>>, %arg11: memref<8x8x384xf32, #tpu.memory_space<vmem>>) attributes {dimension_semantics = [#tpu.dimension_semantics<parallel>, #tpu.dimension_semantics<arbitrary>], iteration_bounds = array<i64: 1, 1>, scalar_prefetch = 0 : i64, scratch_operands = 2 : i64, tpu.core_type = #tpu.core_type<tc>, window_params = [{transform_indices = @transform_0, window_bounds = array<i64: 8, 8, 128>}, {transform_indices = @transform_1, window_bounds = array<i64: 8, 128>}, {pipeline_mode = #tpu.pipeline_mode<synchronous>, transform_indices = @transform_2, window_bounds = array<i64: 128, 384>}, {pipeline_mode = #tpu.pipeline_mode<synchronous>, transform_indices = @transform_3, window_bounds = array<i64: 128, 384>}, {pipeline_mode = #tpu.pipeline_mode<synchronous>, transform_indices = @transform_4, window_bounds = array<i64: 1, 384>}, {pipeline_mode = #tpu.pipeline_mode<synchronous>, transform_indices = @transform_5, window_bounds = array<i64: 1, 128>}, {transform_indices = @transform_6, window_bounds = array<i64: 8, 8, 128>}, {transform_indices = @transform_7, window_bounds = array<i64: 8, 128>}]} {
    %c0_i32 = arith.constant 0 : i32
    %0 = arith.cmpi eq, %arg1, %c0_i32 : i32
    %1 = arith.extui %0 : i1 to i32
    %c0_i32_0 = arith.constant 0 : i32
    %2 = arith.cmpi ne, %1, %c0_i32_0 : i32
    scf.if %2 {
      %c0_85 = arith.constant 0 : index
      %c0_86 = arith.constant 0 : index
      %299 = vector.load %arg3[%c0_85, %c0_86] : memref<8x128xf32, #tpu.memory_space<vmem>>, vector<8x128xf32>
      %c0_87 = arith.constant 0 : index
      %c0_88 = arith.constant 0 : index
      %300 = vector.load %arg10[%c0_87, %c0_88] : memref<8x128xf32, #tpu.memory_space<vmem>>, vector<8x128xf32>
      tpu.vector_store %arg10[%c0_87, %c0_88], %299 {strides = array<i32>} : memref<8x128xf32, #tpu.memory_space<vmem>>, vector<8x128xf32>,
    } else {
    }
    %c0 = arith.constant 0 : index
    %c0_1 = arith.constant 0 : index
    %3 = vector.load %arg4[%c0, %c0_1] : memref<128x384xf32, #tpu.memory_space<vmem>>, vector<128x384xf32>
    %c0_2 = arith.constant 0 : index
    %c0_3 = arith.constant 0 : index
    %4 = vector.load %arg5[%c0_2, %c0_3] : memref<128x384xf32, #tpu.memory_space<vmem>>, vector<128x384xf32>
    %c0_4 = arith.constant 0 : index
    %c0_5 = arith.constant 0 : index
    %5 = vector.load %arg6[%c0_4, %c0_5] : memref<1x384xf32, #tpu.memory_space<vmem>>, vector<1x384xf32>
    %c0_6 = arith.constant 0 : index
    %c0_7 = arith.constant 0 : index
    %6 = vector.load %arg7[%c0_6, %c0_7] : memref<1x128xf32, #tpu.memory_space<vmem>>, vector<1x128xf32>
    %7 = vector.shape_cast %6 : vector<1x128xf32> to vector<1x128xf32>
    %8 = vector.broadcast %7 : vector<1x128xf32> to vector<8x128xf32>
    %c0_8 = arith.constant 0 : index
    %c0_9 = arith.constant 0 : index
    %c0_10 = arith.constant 0 : index
    %9 = vector.load %arg2[%c0_8, %c0_9, %c0_10] : memref<8x8x128xf32, #tpu.memory_space<vmem>>, vector<8x8x128xf32>
    %10 = vector.shape_cast %9 : vector<8x8x128xf32> to vector<64x128xf32>
    %cst = arith.constant dense<0.000000e+00> : vector<64x384xf32>
    %11 = tpu.matmul %10, %3, %cst {dimension_numbers = #tpu.dot_dimension_numbers<[1], [0], [0], [1], [0, 0, 1, 1], [], []>} : vector<64x128xf32>, vector<128x384xf32>, vector<64x384xf32> -> vector<64x384xf32>
    %12 = vector.broadcast %5 : vector<1x384xf32> to vector<64x384xf32>
    %13 = arith.addf %11, %12 : vector<64x384xf32>
    %14 = vector.shape_cast %13 : vector<64x384xf32> to vector<8x8x384xf32>
    %c0_11 = arith.constant 0 : index
    %c0_12 = arith.constant 0 : index
    %c0_13 = arith.constant 0 : index
    %15 = vector.load %arg11[%c0_11, %c0_12, %c0_13] : memref<8x8x384xf32, #tpu.memory_space<vmem>>, vector<8x8x384xf32>
    tpu.vector_store %arg11[%c0_11, %c0_12, %c0_13], %14 {strides = array<i32>} : memref<8x8x384xf32, #tpu.memory_space<vmem>>, vector<8x8x384xf32>,
    %c0_14 = arith.constant 0 : index
    %c0_15 = arith.constant 0 : index
    %16 = vector.load %arg10[%c0_14, %c0_15] : memref<8x128xf32, #tpu.memory_space<vmem>>, vector<8x128xf32>
    %c0_i32_16 = arith.constant 0 : i32
    %17 = arith.index_cast %c0_i32_16 : i32 to index
    %c0_17 = arith.constant 0 : index
    %c0_18 = arith.constant 0 : index
    %18 = vector.load %arg11[%17, %c0_17, %c0_18] : memref<8x8x384xf32, #tpu.memory_space<vmem>>, vector<1x8x384xf32>
    %19 = vector.shape_cast %18 : vector<1x8x384xf32> to vector<8x384xf32>
    %cst_19 = arith.constant dense<0.000000e+00> : vector<8x384xf32>
    %20 = tpu.matmul %16, %4, %cst_19 {dimension_numbers = #tpu.dot_dimension_numbers<[1], [0], [0], [1], [0, 0, 1, 1], [], []>} : vector<8x128xf32>, vector<128x384xf32>, vector<8x384xf32> -> vector<8x384xf32>
    %21 = vector.extract_strided_slice %19 {offsets = [0, 0], sizes = [8, 128], strides = [1, 1]} : vector<8x384xf32> to vector<8x128xf32>
    %22 = vector.extract_strided_slice %20 {offsets = [0, 0], sizes = [8, 128], strides = [1, 1]} : vector<8x384xf32> to vector<8x128xf32>
    %23 = arith.addf %21, %22 : vector<8x128xf32>
    %24 = arith.negf %23 : vector<8x128xf32>
    %25 = math.exp %24 : vector<8x128xf32>
    %cst_20 = arith.constant 1.000000e+00 : f32
    %26 = vector.broadcast %cst_20 : f32 to vector<8x128xf32>
    %27 = arith.addf %26, %25 : vector<8x128xf32>
    %28 = arith.divf %26, %27 : vector<8x128xf32>
    %29 = vector.extract_strided_slice %19 {offsets = [0, 128], sizes = [8, 128], strides = [1, 1]} : vector<8x384xf32> to vector<8x128xf32>
    %30 = vector.extract_strided_slice %20 {offsets = [0, 128], sizes = [8, 128], strides = [1, 1]} : vector<8x384xf32> to vector<8x128xf32>
    %31 = arith.addf %29, %30 : vector<8x128xf32>
    %32 = arith.negf %31 : vector<8x128xf32>
    %33 = math.exp %32 : vector<8x128xf32>
    %cst_21 = arith.constant 1.000000e+00 : f32
    %34 = vector.broadcast %cst_21 : f32 to vector<8x128xf32>
    %35 = arith.addf %34, %33 : vector<8x128xf32>
    %36 = arith.divf %34, %35 : vector<8x128xf32>
    %37 = vector.extract_strided_slice %19 {offsets = [0, 256], sizes = [8, 128], strides = [1, 1]} : vector<8x384xf32> to vector<8x128xf32>
    %38 = vector.extract_strided_slice %20 {offsets = [0, 256], sizes = [8, 128], strides = [1, 1]} : vector<8x384xf32> to vector<8x128xf32>
    %39 = arith.addf %38, %8 : vector<8x128xf32>
    %40 = arith.mulf %28, %39 : vector<8x128xf32>
    %41 = arith.addf %37, %40 : vector<8x128xf32>
    %42 = math.tanh %41 : vector<8x128xf32>
    %cst_22 = arith.constant 1.000000e+00 : f32
    %43 = vector.broadcast %cst_22 : f32 to vector<8x128xf32>
    %44 = arith.subf %43, %36 : vector<8x128xf32>
    %45 = arith.mulf %44, %42 : vector<8x128xf32>
    %46 = arith.mulf %36, %16 : vector<8x128xf32>
    %47 = arith.addf %45, %46 : vector<8x128xf32>
    %48 = arith.index_cast %c0_i32_16 : i32 to index
    %c0_23 = arith.constant 0 : index
    %c0_24 = arith.constant 0 : index
    %49 = vector.load %arg8[%48, %c0_23, %c0_24] : memref<8x8x128xf32, #tpu.memory_space<vmem>>, vector<1x8x128xf32>
    %50 = vector.shape_cast %49 : vector<1x8x128xf32> to vector<8x128xf32>
    %51 = vector.shape_cast %47 : vector<8x128xf32> to vector<1x8x128xf32>
    tpu.vector_store %arg8[%48, %c0_23, %c0_24], %51 {strides = array<i32>} : memref<8x8x128xf32, #tpu.memory_space<vmem>>, vector<1x8x128xf32>,
    %c1_i32 = arith.constant 1 : i32
    %52 = arith.index_cast %c1_i32 : i32 to index
    %c0_25 = arith.constant 0 : index
    %c0_26 = arith.constant 0 : index
    %53 = vector.load %arg11[%52, %c0_25, %c0_26] : memref<8x8x384xf32, #tpu.memory_space<vmem>>, vector<1x8x384xf32>
    %54 = vector.shape_cast %53 : vector<1x8x384xf32> to vector<8x384xf32>
    %cst_27 = arith.constant dense<0.000000e+00> : vector<8x384xf32>
    %55 = tpu.matmul %47, %4, %cst_27 {dimension_numbers = #tpu.dot_dimension_numbers<[1], [0], [0], [1], [0, 0, 1, 1], [], []>} : vector<8x128xf32>, vector<128x384xf32>, vector<8x384xf32> -> vector<8x384xf32>
    %56 = vector.extract_strided_slice %54 {offsets = [0, 0], sizes = [8, 128], strides = [1, 1]} : vector<8x384xf32> to vector<8x128xf32>
    %57 = vector.extract_strided_slice %55 {offsets = [0, 0], sizes = [8, 128], strides = [1, 1]} : vector<8x384xf32> to vector<8x128xf32>
    %58 = arith.addf %56, %57 : vector<8x128xf32>
    %59 = arith.negf %58 : vector<8x128xf32>
    %60 = math.exp %59 : vector<8x128xf32>
    %cst_28 = arith.constant 1.000000e+00 : f32
    %61 = vector.broadcast %cst_28 : f32 to vector<8x128xf32>
    %62 = arith.addf %61, %60 : vector<8x128xf32>
    %63 = arith.divf %61, %62 : vector<8x128xf32>
    %64 = vector.extract_strided_slice %54 {offsets = [0, 128], sizes = [8, 128], strides = [1, 1]} : vector<8x384xf32> to vector<8x128xf32>
    %65 = vector.extract_strided_slice %55 {offsets = [0, 128], sizes = [8, 128], strides = [1, 1]} : vector<8x384xf32> to vector<8x128xf32>
    %66 = arith.addf %64, %65 : vector<8x128xf32>
    %67 = arith.negf %66 : vector<8x128xf32>
    %68 = math.exp %67 : vector<8x128xf32>
    %cst_29 = arith.constant 1.000000e+00 : f32
    %69 = vector.broadcast %cst_29 : f32 to vector<8x128xf32>
    %70 = arith.addf %69, %68 : vector<8x128xf32>
    %71 = arith.divf %69, %70 : vector<8x128xf32>
    %72 = vector.extract_strided_slice %54 {offsets = [0, 256], sizes = [8, 128], strides = [1, 1]} : vector<8x384xf32> to vector<8x128xf32>
    %73 = vector.extract_strided_slice %55 {offsets = [0, 256], sizes = [8, 128], strides = [1, 1]} : vector<8x384xf32> to vector<8x128xf32>
    %74 = arith.addf %73, %8 : vector<8x128xf32>
    %75 = arith.mulf %63, %74 : vector<8x128xf32>
    %76 = arith.addf %72, %75 : vector<8x128xf32>
    %77 = math.tanh %76 : vector<8x128xf32>
    %cst_30 = arith.constant 1.000000e+00 : f32
    %78 = vector.broadcast %cst_30 : f32 to vector<8x128xf32>
    %79 = arith.subf %78, %71 : vector<8x128xf32>
    %80 = arith.mulf %79, %77 : vector<8x128xf32>
    %81 = arith.mulf %71, %47 : vector<8x128xf32>
    %82 = arith.addf %80, %81 : vector<8x128xf32>
    %83 = arith.index_cast %c1_i32 : i32 to index
    %c0_31 = arith.constant 0 : index
    %c0_32 = arith.constant 0 : index
    %84 = vector.load %arg8[%83, %c0_31, %c0_32] : memref<8x8x128xf32, #tpu.memory_space<vmem>>, vector<1x8x128xf32>
    %85 = vector.shape_cast %84 : vector<1x8x128xf32> to vector<8x128xf32>
    %86 = vector.shape_cast %82 : vector<8x128xf32> to vector<1x8x128xf32>
    tpu.vector_store %arg8[%83, %c0_31, %c0_32], %86 {strides = array<i32>} : memref<8x8x128xf32, #tpu.memory_space<vmem>>, vector<1x8x128xf32>,
    %c2_i32 = arith.constant 2 : i32
    %87 = arith.index_cast %c2_i32 : i32 to index
    %c0_33 = arith.constant 0 : index
    %c0_34 = arith.constant 0 : index
    %88 = vector.load %arg11[%87, %c0_33, %c0_34] : memref<8x8x384xf32, #tpu.memory_space<vmem>>, vector<1x8x384xf32>
    %89 = vector.shape_cast %88 : vector<1x8x384xf32> to vector<8x384xf32>
    %cst_35 = arith.constant dense<0.000000e+00> : vector<8x384xf32>
    %90 = tpu.matmul %82, %4, %cst_35 {dimension_numbers = #tpu.dot_dimension_numbers<[1], [0], [0], [1], [0, 0, 1, 1], [], []>} : vector<8x128xf32>, vector<128x384xf32>, vector<8x384xf32> -> vector<8x384xf32>
    %91 = vector.extract_strided_slice %89 {offsets = [0, 0], sizes = [8, 128], strides = [1, 1]} : vector<8x384xf32> to vector<8x128xf32>
    %92 = vector.extract_strided_slice %90 {offsets = [0, 0], sizes = [8, 128], strides = [1, 1]} : vector<8x384xf32> to vector<8x128xf32>
    %93 = arith.addf %91, %92 : vector<8x128xf32>
    %94 = arith.negf %93 : vector<8x128xf32>
    %95 = math.exp %94 : vector<8x128xf32>
    %cst_36 = arith.constant 1.000000e+00 : f32
    %96 = vector.broadcast %cst_36 : f32 to vector<8x128xf32>
    %97 = arith.addf %96, %95 : vector<8x128xf32>
    %98 = arith.divf %96, %97 : vector<8x128xf32>
    %99 = vector.extract_strided_slice %89 {offsets = [0, 128], sizes = [8, 128], strides = [1, 1]} : vector<8x384xf32> to vector<8x128xf32>
    %100 = vector.extract_strided_slice %90 {offsets = [0, 128], sizes = [8, 128], strides = [1, 1]} : vector<8x384xf32> to vector<8x128xf32>
    %101 = arith.addf %99, %100 : vector<8x128xf32>
    %102 = arith.negf %101 : vector<8x128xf32>
    %103 = math.exp %102 : vector<8x128xf32>
    %cst_37 = arith.constant 1.000000e+00 : f32
    %104 = vector.broadcast %cst_37 : f32 to vector<8x128xf32>
    %105 = arith.addf %104, %103 : vector<8x128xf32>
    %106 = arith.divf %104, %105 : vector<8x128xf32>
    %107 = vector.extract_strided_slice %89 {offsets = [0, 256], sizes = [8, 128], strides = [1, 1]} : vector<8x384xf32> to vector<8x128xf32>
    %108 = vector.extract_strided_slice %90 {offsets = [0, 256], sizes = [8, 128], strides = [1, 1]} : vector<8x384xf32> to vector<8x128xf32>
    %109 = arith.addf %108, %8 : vector<8x128xf32>
    %110 = arith.mulf %98, %109 : vector<8x128xf32>
    %111 = arith.addf %107, %110 : vector<8x128xf32>
    %112 = math.tanh %111 : vector<8x128xf32>
    %cst_38 = arith.constant 1.000000e+00 : f32
    %113 = vector.broadcast %cst_38 : f32 to vector<8x128xf32>
    %114 = arith.subf %113, %106 : vector<8x128xf32>
    %115 = arith.mulf %114, %112 : vector<8x128xf32>
    %116 = arith.mulf %106, %82 : vector<8x128xf32>
    %117 = arith.addf %115, %116 : vector<8x128xf32>
    %118 = arith.index_cast %c2_i32 : i32 to index
    %c0_39 = arith.constant 0 : index
    %c0_40 = arith.constant 0 : index
    %119 = vector.load %arg8[%118, %c0_39, %c0_40] : memref<8x8x128xf32, #tpu.memory_space<vmem>>, vector<1x8x128xf32>
    %120 = vector.shape_cast %119 : vector<1x8x128xf32> to vector<8x128xf32>
    %121 = vector.shape_cast %117 : vector<8x128xf32> to vector<1x8x128xf32>
    tpu.vector_store %arg8[%118, %c0_39, %c0_40], %121 {strides = array<i32>} : memref<8x8x128xf32, #tpu.memory_space<vmem>>, vector<1x8x128xf32>,
    %c3_i32 = arith.constant 3 : i32
    %122 = arith.index_cast %c3_i32 : i32 to index
    %c0_41 = arith.constant 0 : index
    %c0_42 = arith.constant 0 : index
    %123 = vector.load %arg11[%122, %c0_41, %c0_42] : memref<8x8x384xf32, #tpu.memory_space<vmem>>, vector<1x8x384xf32>
    %124 = vector.shape_cast %123 : vector<1x8x384xf32> to vector<8x384xf32>
    %cst_43 = arith.constant dense<0.000000e+00> : vector<8x384xf32>
    %125 = tpu.matmul %117, %4, %cst_43 {dimension_numbers = #tpu.dot_dimension_numbers<[1], [0], [0], [1], [0, 0, 1, 1], [], []>} : vector<8x128xf32>, vector<128x384xf32>, vector<8x384xf32> -> vector<8x384xf32>
    %126 = vector.extract_strided_slice %124 {offsets = [0, 0], sizes = [8, 128], strides = [1, 1]} : vector<8x384xf32> to vector<8x128xf32>
    %127 = vector.extract_strided_slice %125 {offsets = [0, 0], sizes = [8, 128], strides = [1, 1]} : vector<8x384xf32> to vector<8x128xf32>
    %128 = arith.addf %126, %127 : vector<8x128xf32>
    %129 = arith.negf %128 : vector<8x128xf32>
    %130 = math.exp %129 : vector<8x128xf32>
    %cst_44 = arith.constant 1.000000e+00 : f32
    %131 = vector.broadcast %cst_44 : f32 to vector<8x128xf32>
    %132 = arith.addf %131, %130 : vector<8x128xf32>
    %133 = arith.divf %131, %132 : vector<8x128xf32>
    %134 = vector.extract_strided_slice %124 {offsets = [0, 128], sizes = [8, 128], strides = [1, 1]} : vector<8x384xf32> to vector<8x128xf32>
    %135 = vector.extract_strided_slice %125 {offsets = [0, 128], sizes = [8, 128], strides = [1, 1]} : vector<8x384xf32> to vector<8x128xf32>
    %136 = arith.addf %134, %135 : vector<8x128xf32>
    %137 = arith.negf %136 : vector<8x128xf32>
    %138 = math.exp %137 : vector<8x128xf32>
    %cst_45 = arith.constant 1.000000e+00 : f32
    %139 = vector.broadcast %cst_45 : f32 to vector<8x128xf32>
    %140 = arith.addf %139, %138 : vector<8x128xf32>
    %141 = arith.divf %139, %140 : vector<8x128xf32>
    %142 = vector.extract_strided_slice %124 {offsets = [0, 256], sizes = [8, 128], strides = [1, 1]} : vector<8x384xf32> to vector<8x128xf32>
    %143 = vector.extract_strided_slice %125 {offsets = [0, 256], sizes = [8, 128], strides = [1, 1]} : vector<8x384xf32> to vector<8x128xf32>
    %144 = arith.addf %143, %8 : vector<8x128xf32>
    %145 = arith.mulf %133, %144 : vector<8x128xf32>
    %146 = arith.addf %142, %145 : vector<8x128xf32>
    %147 = math.tanh %146 : vector<8x128xf32>
    %cst_46 = arith.constant 1.000000e+00 : f32
    %148 = vector.broadcast %cst_46 : f32 to vector<8x128xf32>
    %149 = arith.subf %148, %141 : vector<8x128xf32>
    %150 = arith.mulf %149, %147 : vector<8x128xf32>
    %151 = arith.mulf %141, %117 : vector<8x128xf32>
    %152 = arith.addf %150, %151 : vector<8x128xf32>
    %153 = arith.index_cast %c3_i32 : i32 to index
    %c0_47 = arith.constant 0 : index
    %c0_48 = arith.constant 0 : index
    %154 = vector.load %arg8[%153, %c0_47, %c0_48] : memref<8x8x128xf32, #tpu.memory_space<vmem>>, vector<1x8x128xf32>
    %155 = vector.shape_cast %154 : vector<1x8x128xf32> to vector<8x128xf32>
    %156 = vector.shape_cast %152 : vector<8x128xf32> to vector<1x8x128xf32>
    tpu.vector_store %arg8[%153, %c0_47, %c0_48], %156 {strides = array<i32>} : memref<8x8x128xf32, #tpu.memory_space<vmem>>, vector<1x8x128xf32>,
    %c4_i32 = arith.constant 4 : i32
    %157 = arith.index_cast %c4_i32 : i32 to index
    %c0_49 = arith.constant 0 : index
    %c0_50 = arith.constant 0 : index
    %158 = vector.load %arg11[%157, %c0_49, %c0_50] : memref<8x8x384xf32, #tpu.memory_space<vmem>>, vector<1x8x384xf32>
    %159 = vector.shape_cast %158 : vector<1x8x384xf32> to vector<8x384xf32>
    %cst_51 = arith.constant dense<0.000000e+00> : vector<8x384xf32>
    %160 = tpu.matmul %152, %4, %cst_51 {dimension_numbers = #tpu.dot_dimension_numbers<[1], [0], [0], [1], [0, 0, 1, 1], [], []>} : vector<8x128xf32>, vector<128x384xf32>, vector<8x384xf32> -> vector<8x384xf32>
    %161 = vector.extract_strided_slice %159 {offsets = [0, 0], sizes = [8, 128], strides = [1, 1]} : vector<8x384xf32> to vector<8x128xf32>
    %162 = vector.extract_strided_slice %160 {offsets = [0, 0], sizes = [8, 128], strides = [1, 1]} : vector<8x384xf32> to vector<8x128xf32>
    %163 = arith.addf %161, %162 : vector<8x128xf32>
    %164 = arith.negf %163 : vector<8x128xf32>
    %165 = math.exp %164 : vector<8x128xf32>
    %cst_52 = arith.constant 1.000000e+00 : f32
    %166 = vector.broadcast %cst_52 : f32 to vector<8x128xf32>
    %167 = arith.addf %166, %165 : vector<8x128xf32>
    %168 = arith.divf %166, %167 : vector<8x128xf32>
    %169 = vector.extract_strided_slice %159 {offsets = [0, 128], sizes = [8, 128], strides = [1, 1]} : vector<8x384xf32> to vector<8x128xf32>
    %170 = vector.extract_strided_slice %160 {offsets = [0, 128], sizes = [8, 128], strides = [1, 1]} : vector<8x384xf32> to vector<8x128xf32>
    %171 = arith.addf %169, %170 : vector<8x128xf32>
    %172 = arith.negf %171 : vector<8x128xf32>
    %173 = math.exp %172 : vector<8x128xf32>
    %cst_53 = arith.constant 1.000000e+00 : f32
    %174 = vector.broadcast %cst_53 : f32 to vector<8x128xf32>
    %175 = arith.addf %174, %173 : vector<8x128xf32>
    %176 = arith.divf %174, %175 : vector<8x128xf32>
    %177 = vector.extract_strided_slice %159 {offsets = [0, 256], sizes = [8, 128], strides = [1, 1]} : vector<8x384xf32> to vector<8x128xf32>
    %178 = vector.extract_strided_slice %160 {offsets = [0, 256], sizes = [8, 128], strides = [1, 1]} : vector<8x384xf32> to vector<8x128xf32>
    %179 = arith.addf %178, %8 : vector<8x128xf32>
    %180 = arith.mulf %168, %179 : vector<8x128xf32>
    %181 = arith.addf %177, %180 : vector<8x128xf32>
    %182 = math.tanh %181 : vector<8x128xf32>
    %cst_54 = arith.constant 1.000000e+00 : f32
    %183 = vector.broadcast %cst_54 : f32 to vector<8x128xf32>
    %184 = arith.subf %183, %176 : vector<8x128xf32>
    %185 = arith.mulf %184, %182 : vector<8x128xf32>
    %186 = arith.mulf %176, %152 : vector<8x128xf32>
    %187 = arith.addf %185, %186 : vector<8x128xf32>
    %188 = arith.index_cast %c4_i32 : i32 to index
    %c0_55 = arith.constant 0 : index
    %c0_56 = arith.constant 0 : index
    %189 = vector.load %arg8[%188, %c0_55, %c0_56] : memref<8x8x128xf32, #tpu.memory_space<vmem>>, vector<1x8x128xf32>
    %190 = vector.shape_cast %189 : vector<1x8x128xf32> to vector<8x128xf32>
    %191 = vector.shape_cast %187 : vector<8x128xf32> to vector<1x8x128xf32>
    tpu.vector_store %arg8[%188, %c0_55, %c0_56], %191 {strides = array<i32>} : memref<8x8x128xf32, #tpu.memory_space<vmem>>, vector<1x8x128xf32>,
    %c5_i32 = arith.constant 5 : i32
    %192 = arith.index_cast %c5_i32 : i32 to index
    %c0_57 = arith.constant 0 : index
    %c0_58 = arith.constant 0 : index
    %193 = vector.load %arg11[%192, %c0_57, %c0_58] : memref<8x8x384xf32, #tpu.memory_space<vmem>>, vector<1x8x384xf32>
    %194 = vector.shape_cast %193 : vector<1x8x384xf32> to vector<8x384xf32>
    %cst_59 = arith.constant dense<0.000000e+00> : vector<8x384xf32>
    %195 = tpu.matmul %187, %4, %cst_59 {dimension_numbers = #tpu.dot_dimension_numbers<[1], [0], [0], [1], [0, 0, 1, 1], [], []>} : vector<8x128xf32>, vector<128x384xf32>, vector<8x384xf32> -> vector<8x384xf32>
    %196 = vector.extract_strided_slice %194 {offsets = [0, 0], sizes = [8, 128], strides = [1, 1]} : vector<8x384xf32> to vector<8x128xf32>
    %197 = vector.extract_strided_slice %195 {offsets = [0, 0], sizes = [8, 128], strides = [1, 1]} : vector<8x384xf32> to vector<8x128xf32>
    %198 = arith.addf %196, %197 : vector<8x128xf32>
    %199 = arith.negf %198 : vector<8x128xf32>
    %200 = math.exp %199 : vector<8x128xf32>
    %cst_60 = arith.constant 1.000000e+00 : f32
    %201 = vector.broadcast %cst_60 : f32 to vector<8x128xf32>
    %202 = arith.addf %201, %200 : vector<8x128xf32>
    %203 = arith.divf %201, %202 : vector<8x128xf32>
    %204 = vector.extract_strided_slice %194 {offsets = [0, 128], sizes = [8, 128], strides = [1, 1]} : vector<8x384xf32> to vector<8x128xf32>
    %205 = vector.extract_strided_slice %195 {offsets = [0, 128], sizes = [8, 128], strides = [1, 1]} : vector<8x384xf32> to vector<8x128xf32>
    %206 = arith.addf %204, %205 : vector<8x128xf32>
    %207 = arith.negf %206 : vector<8x128xf32>
    %208 = math.exp %207 : vector<8x128xf32>
    %cst_61 = arith.constant 1.000000e+00 : f32
    %209 = vector.broadcast %cst_61 : f32 to vector<8x128xf32>
    %210 = arith.addf %209, %208 : vector<8x128xf32>
    %211 = arith.divf %209, %210 : vector<8x128xf32>
    %212 = vector.extract_strided_slice %194 {offsets = [0, 256], sizes = [8, 128], strides = [1, 1]} : vector<8x384xf32> to vector<8x128xf32>
    %213 = vector.extract_strided_slice %195 {offsets = [0, 256], sizes = [8, 128], strides = [1, 1]} : vector<8x384xf32> to vector<8x128xf32>
    %214 = arith.addf %213, %8 : vector<8x128xf32>
    %215 = arith.mulf %203, %214 : vector<8x128xf32>
    %216 = arith.addf %212, %215 : vector<8x128xf32>
    %217 = math.tanh %216 : vector<8x128xf32>
    %cst_62 = arith.constant 1.000000e+00 : f32
    %218 = vector.broadcast %cst_62 : f32 to vector<8x128xf32>
    %219 = arith.subf %218, %211 : vector<8x128xf32>
    %220 = arith.mulf %219, %217 : vector<8x128xf32>
    %221 = arith.mulf %211, %187 : vector<8x128xf32>
    %222 = arith.addf %220, %221 : vector<8x128xf32>
    %223 = arith.index_cast %c5_i32 : i32 to index
    %c0_63 = arith.constant 0 : index
    %c0_64 = arith.constant 0 : index
    %224 = vector.load %arg8[%223, %c0_63, %c0_64] : memref<8x8x128xf32, #tpu.memory_space<vmem>>, vector<1x8x128xf32>
    %225 = vector.shape_cast %224 : vector<1x8x128xf32> to vector<8x128xf32>
    %226 = vector.shape_cast %222 : vector<8x128xf32> to vector<1x8x128xf32>
    tpu.vector_store %arg8[%223, %c0_63, %c0_64], %226 {strides = array<i32>} : memref<8x8x128xf32, #tpu.memory_space<vmem>>, vector<1x8x128xf32>,
    %c6_i32 = arith.constant 6 : i32
    %227 = arith.index_cast %c6_i32 : i32 to index
    %c0_65 = arith.constant 0 : index
    %c0_66 = arith.constant 0 : index
    %228 = vector.load %arg11[%227, %c0_65, %c0_66] : memref<8x8x384xf32, #tpu.memory_space<vmem>>, vector<1x8x384xf32>
    %229 = vector.shape_cast %228 : vector<1x8x384xf32> to vector<8x384xf32>
    %cst_67 = arith.constant dense<0.000000e+00> : vector<8x384xf32>
    %230 = tpu.matmul %222, %4, %cst_67 {dimension_numbers = #tpu.dot_dimension_numbers<[1], [0], [0], [1], [0, 0, 1, 1], [], []>} : vector<8x128xf32>, vector<128x384xf32>, vector<8x384xf32> -> vector<8x384xf32>
    %231 = vector.extract_strided_slice %229 {offsets = [0, 0], sizes = [8, 128], strides = [1, 1]} : vector<8x384xf32> to vector<8x128xf32>
    %232 = vector.extract_strided_slice %230 {offsets = [0, 0], sizes = [8, 128], strides = [1, 1]} : vector<8x384xf32> to vector<8x128xf32>
    %233 = arith.addf %231, %232 : vector<8x128xf32>
    %234 = arith.negf %233 : vector<8x128xf32>
    %235 = math.exp %234 : vector<8x128xf32>
    %cst_68 = arith.constant 1.000000e+00 : f32
    %236 = vector.broadcast %cst_68 : f32 to vector<8x128xf32>
    %237 = arith.addf %236, %235 : vector<8x128xf32>
    %238 = arith.divf %236, %237 : vector<8x128xf32>
    %239 = vector.extract_strided_slice %229 {offsets = [0, 128], sizes = [8, 128], strides = [1, 1]} : vector<8x384xf32> to vector<8x128xf32>
    %240 = vector.extract_strided_slice %230 {offsets = [0, 128], sizes = [8, 128], strides = [1, 1]} : vector<8x384xf32> to vector<8x128xf32>
    %241 = arith.addf %239, %240 : vector<8x128xf32>
    %242 = arith.negf %241 : vector<8x128xf32>
    %243 = math.exp %242 : vector<8x128xf32>
    %cst_69 = arith.constant 1.000000e+00 : f32
    %244 = vector.broadcast %cst_69 : f32 to vector<8x128xf32>
    %245 = arith.addf %244, %243 : vector<8x128xf32>
    %246 = arith.divf %244, %245 : vector<8x128xf32>
    %247 = vector.extract_strided_slice %229 {offsets = [0, 256], sizes = [8, 128], strides = [1, 1]} : vector<8x384xf32> to vector<8x128xf32>
    %248 = vector.extract_strided_slice %230 {offsets = [0, 256], sizes = [8, 128], strides = [1, 1]} : vector<8x384xf32> to vector<8x128xf32>
    %249 = arith.addf %248, %8 : vector<8x128xf32>
    %250 = arith.mulf %238, %249 : vector<8x128xf32>
    %251 = arith.addf %247, %250 : vector<8x128xf32>
    %252 = math.tanh %251 : vector<8x128xf32>
    %cst_70 = arith.constant 1.000000e+00 : f32
    %253 = vector.broadcast %cst_70 : f32 to vector<8x128xf32>
    %254 = arith.subf %253, %246 : vector<8x128xf32>
    %255 = arith.mulf %254, %252 : vector<8x128xf32>
    %256 = arith.mulf %246, %222 : vector<8x128xf32>
    %257 = arith.addf %255, %256 : vector<8x128xf32>
    %258 = arith.index_cast %c6_i32 : i32 to index
    %c0_71 = arith.constant 0 : index
    %c0_72 = arith.constant 0 : index
    %259 = vector.load %arg8[%258, %c0_71, %c0_72] : memref<8x8x128xf32, #tpu.memory_space<vmem>>, vector<1x8x128xf32>
    %260 = vector.shape_cast %259 : vector<1x8x128xf32> to vector<8x128xf32>
    %261 = vector.shape_cast %257 : vector<8x128xf32> to vector<1x8x128xf32>
    tpu.vector_store %arg8[%258, %c0_71, %c0_72], %261 {strides = array<i32>} : memref<8x8x128xf32, #tpu.memory_space<vmem>>, vector<1x8x128xf32>,
    %c7_i32 = arith.constant 7 : i32
    %262 = arith.index_cast %c7_i32 : i32 to index
    %c0_73 = arith.constant 0 : index
    %c0_74 = arith.constant 0 : index
    %263 = vector.load %arg11[%262, %c0_73, %c0_74] : memref<8x8x384xf32, #tpu.memory_space<vmem>>, vector<1x8x384xf32>
    %264 = vector.shape_cast %263 : vector<1x8x384xf32> to vector<8x384xf32>
    %cst_75 = arith.constant dense<0.000000e+00> : vector<8x384xf32>
    %265 = tpu.matmul %257, %4, %cst_75 {dimension_numbers = #tpu.dot_dimension_numbers<[1], [0], [0], [1], [0, 0, 1, 1], [], []>} : vector<8x128xf32>, vector<128x384xf32>, vector<8x384xf32> -> vector<8x384xf32>
    %266 = vector.extract_strided_slice %264 {offsets = [0, 0], sizes = [8, 128], strides = [1, 1]} : vector<8x384xf32> to vector<8x128xf32>
    %267 = vector.extract_strided_slice %265 {offsets = [0, 0], sizes = [8, 128], strides = [1, 1]} : vector<8x384xf32> to vector<8x128xf32>
    %268 = arith.addf %266, %267 : vector<8x128xf32>
    %269 = arith.negf %268 : vector<8x128xf32>
    %270 = math.exp %269 : vector<8x128xf32>
    %cst_76 = arith.constant 1.000000e+00 : f32
    %271 = vector.broadcast %cst_76 : f32 to vector<8x128xf32>
    %272 = arith.addf %271, %270 : vector<8x128xf32>
    %273 = arith.divf %271, %272 : vector<8x128xf32>
    %274 = vector.extract_strided_slice %264 {offsets = [0, 128], sizes = [8, 128], strides = [1, 1]} : vector<8x384xf32> to vector<8x128xf32>
    %275 = vector.extract_strided_slice %265 {offsets = [0, 128], sizes = [8, 128], strides = [1, 1]} : vector<8x384xf32> to vector<8x128xf32>
    %276 = arith.addf %274, %275 : vector<8x128xf32>
    %277 = arith.negf %276 : vector<8x128xf32>
    %278 = math.exp %277 : vector<8x128xf32>
    %cst_77 = arith.constant 1.000000e+00 : f32
    %279 = vector.broadcast %cst_77 : f32 to vector<8x128xf32>
    %280 = arith.addf %279, %278 : vector<8x128xf32>
    %281 = arith.divf %279, %280 : vector<8x128xf32>
    %282 = vector.extract_strided_slice %264 {offsets = [0, 256], sizes = [8, 128], strides = [1, 1]} : vector<8x384xf32> to vector<8x128xf32>
    %283 = vector.extract_strided_slice %265 {offsets = [0, 256], sizes = [8, 128], strides = [1, 1]} : vector<8x384xf32> to vector<8x128xf32>
    %284 = arith.addf %283, %8 : vector<8x128xf32>
    %285 = arith.mulf %273, %284 : vector<8x128xf32>
    %286 = arith.addf %282, %285 : vector<8x128xf32>
    %287 = math.tanh %286 : vector<8x128xf32>
    %cst_78 = arith.constant 1.000000e+00 : f32
    %288 = vector.broadcast %cst_78 : f32 to vector<8x128xf32>
    %289 = arith.subf %288, %281 : vector<8x128xf32>
    %290 = arith.mulf %289, %287 : vector<8x128xf32>
    %291 = arith.mulf %281, %257 : vector<8x128xf32>
    %292 = arith.addf %290, %291 : vector<8x128xf32>
    %293 = arith.index_cast %c7_i32 : i32 to index
    %c0_79 = arith.constant 0 : index
    %c0_80 = arith.constant 0 : index
    %294 = vector.load %arg8[%293, %c0_79, %c0_80] : memref<8x8x128xf32, #tpu.memory_space<vmem>>, vector<1x8x128xf32>
    %295 = vector.shape_cast %294 : vector<1x8x128xf32> to vector<8x128xf32>
    %296 = vector.shape_cast %292 : vector<8x128xf32> to vector<1x8x128xf32>
    tpu.vector_store %arg8[%293, %c0_79, %c0_80], %296 {strides = array<i32>} : memref<8x8x128xf32, #tpu.memory_space<vmem>>, vector<1x8x128xf32>,
    %c8_i32 = arith.constant 8 : i32
    %c0_81 = arith.constant 0 : index
    %c0_82 = arith.constant 0 : index
    %297 = vector.load %arg10[%c0_81, %c0_82] : memref<8x128xf32, #tpu.memory_space<vmem>>, vector<8x128xf32>
    tpu.vector_store %arg10[%c0_81, %c0_82], %292 {strides = array<i32>} : memref<8x128xf32, #tpu.memory_space<vmem>>, vector<8x128xf32>,
    %c0_83 = arith.constant 0 : index
    %c0_84 = arith.constant 0 : index
    %298 = vector.load %arg9[%c0_83, %c0_84] : memref<8x128xf32, #tpu.memory_space<vmem>>, vector<8x128xf32>
    tpu.vector_store %arg9[%c0_83, %c0_84], %292 {strides = array<i32>} : memref<8x128xf32, #tpu.memory_space<vmem>>, vector<8x128xf32>,
    return
  }
  func.func @transform_0(%arg0: i32, %arg1: i32) -> (i32, i32, i32) {
    %c0_i32 = arith.constant 0 : i32
    %c0_i32_0 = arith.constant 0 : i32
    return %arg1, %arg0, %c0_i32 : i32, i32, i32
  }
  func.func @transform_1(%arg0: i32, %arg1: i32) -> (i32, i32) {
    %c0_i32 = arith.constant 0 : i32
    %c0_i32_0 = arith.constant 0 : i32
    return %arg0, %c0_i32 : i32, i32
  }
  func.func @transform_2(%arg0: i32, %arg1: i32) -> (i32, i32) {
    %c0_i32 = arith.constant 0 : i32
    %c0_i32_0 = arith.constant 0 : i32
    %c0_i32_1 = arith.constant 0 : i32
    return %c0_i32, %c0_i32_0 : i32, i32
  }
  func.func @transform_3(%arg0: i32, %arg1: i32) -> (i32, i32) {
    %c0_i32 = arith.constant 0 : i32
    %c0_i32_0 = arith.constant 0 : i32
    %c0_i32_1 = arith.constant 0 : i32
    return %c0_i32, %c0_i32_0 : i32, i32
  }
  func.func @transform_4(%arg0: i32, %arg1: i32) -> (i32, i32) {
    %c0_i32 = arith.constant 0 : i32
    %c0_i32_0 = arith.constant 0 : i32
    %c0_i32_1 = arith.constant 0 : i32
    return %c0_i32, %c0_i32_0 : i32, i32
  }
  func.func @transform_5(%arg0: i32, %arg1: i32) -> (i32, i32) {
    %c0_i32 = arith.constant 0 : i32
    %c0_i32_0 = arith.constant 0 : i32
    %c0_i32_1 = arith.constant 0 : i32
    return %c0_i32, %c0_i32_0 : i32, i32
  }
  func.func @transform_6(%arg0: i32, %arg1: i32) -> (i32, i32, i32) {
    %c0_i32 = arith.constant 0 : i32
    %c0_i32_0 = arith.constant 0 : i32
    return %arg1, %arg0, %c0_i32 : i32, i32, i32
  }
  func.func @transform_7(%arg0: i32, %arg1: i32) -> (i32, i32) {
    %c0_i32 = arith.constant 0 : i32
    %c0_i32_0 = arith.constant 0 : i32
    return %arg0, %c0_i32 : i32, i32
  }
}

</mosaic_0001>

<bundles_post_ra>
// kernel: tpu_custom_call.1
= control target key start
LH: loop header
LB: loop body
LE: loop exit
PB: predicated region body
PF: predicated region fallthrough
CT: control target
= control target key end

     0   :  { %13 = vsyncpa [#allocation5], 0  ;;  %s3692_s0 = inlined_call_operand.hbm [shape: f32[8,8,128], index: 0, kind: input, shape index: {}]   ;;  %s3693_s1 = inlined_call_operand.hbm [shape: f32[8,128], index: 1, kind: input, shape index: {}]   ;;  %s3694_s2 = inlined_call_operand.hbm [shape: f32[128,384], index: 2, kind: input, shape index: {}]   ;;  %s3695_s3 = inlined_call_operand.hbm [shape: f32[128,384], index: 3, kind: input, shape index: {}]   ;;  %s3696_s4 = inlined_call_operand.vmem [shape: f32[1,384], index: 4, kind: input, shape index: {}]   ;;  %s3697_s5 = inlined_call_operand.vmem [shape: f32[1,128], index: 5, kind: input, shape index: {}]   ;;  %s3698_s6 = inlined_call_operand.hbm [shape: f32[8,8,128], index: 6, kind: output, shape index: {0}]   ;;  %s3699_s7 = inlined_call_operand.hbm [shape: f32[8,128], index: 7, kind: output, shape index: {1}]  }
   0x1   :  { %14 = vsyncpa [#allocation8], 0 }
   0x2   :  { %15 = vsyncpa [#allocation11], 0 }
   0x3   :  { %16 = vsyncpa [#allocation6], 0 }
   0x4   :  { %17 = vsyncpa [#allocation14], 0  ;;  %s3122_s24 = smov [#allocation7]   ;;  %s3123_s26 = smov [#allocation4]  }
   0x5   :  { %s36_s25 = sshll.u32 %s3122_s24, 4  ;;  %s23_s27 = sshll.u32 %s3123_s26, 4  ;;  %s37_s25 = int_to_ptr.vmem [resolvable:$true] %s36_s25  ;;  %s3175_s27 = int_to_ptr.vmem [resolvable:$true] %s23_s27 }
   0x6   :  { %s2980_s30 = scalar_lea.hbm %s3693_s1, 128 }
   0x7   :  { %p2981_p0 = scmp.ne.s32.totalorder %s3693_s1, %s2980_s30  ;;  %p2984_p1 = scmp.lt.u32.totalorder %s2980_s30, %s3693_s1 }
   0x9   :  { %p2986_p2 = pnand %p2984_p1, %p2981_p0 }
   0xb   :  { %2989 = shalt.err (!%p2986_p2)
}
   0xc   :  { %s2990_s12 = scalar_lea.vmem %s37_s25, 128  ;;  %p2995_p4 = scmp.lt.s32.totalorder %s37_s25, %s37_s25 }
   0xd   :  { %p2991_p3 = scmp.ne.s32.totalorder %s37_s25, %s2990_s12  ;;  %p2996_p5 = scmp.lt.s32.totalorder %s2990_s12, %s2990_s12 }
   0xf   :  { %p2997_p6 = por %p2996_p5, %p2995_p4 }
  0x11   :  { %p2998_p7 = pnand %p2997_p6, %p2991_p3 }
  0x13   :  { %3001 = shalt.err (!%p2998_p7)
}
  0x14   :  { %39 = dma.hbm_to_vmem [thread:$0]  %s3693_s1, 128, %s37_s25, [#allocation8]  }
  0x15   :  { %s3002_s17 = scalar_lea.hbm %s3692_s0, 1024 }
  0x16   :  { %p3003_p8 = scmp.ne.s32.totalorder %s3692_s0, %s3002_s17  ;;  %p3006_p9 = scmp.lt.u32.totalorder %s3002_s17, %s3692_s0 }
  0x18   :  { %p3008_p10 = pnand %p3006_p9, %p3003_p8 }
  0x1a   :  { %3011 = shalt.err (!%p3008_p10)
}
  0x1b   :  { %s3012_s22 = scalar_lea.vmem %s3175_s27, 1024  ;;  %p3017_p12 = scmp.lt.s32.totalorder %s3175_s27, %s3175_s27 }
  0x1c   :  { %p3013_p11 = scmp.ne.s32.totalorder %s3175_s27, %s3012_s22  ;;  %p3018_p13 = scmp.lt.s32.totalorder %s3012_s22, %s3012_s22 }
  0x1e   :  { %p3019_p0 = por %p3018_p13, %p3017_p12 }
  0x20   :  { %p3020_p1 = pnand %p3019_p0, %p3013_p11 }
  0x22   :  { %3023 = shalt.err (!%p3020_p1)
}
  0x23   :  { %s3124_s1 = smov 128   ;;  %s3125_s23 = smov 8  }
  0x24   :  { %29 = dma.hbm_to_vmem [thread:$0]  %s3692_s0, 1024, %s3175_s27, [#allocation5], %s3124_s1, %s3124_s1, %s3125_s23  }
  0x25   :  { %s3126_s26 = smov [#allocation9]   ;;  %s3024_s8 = scalar_lea.hbm %s3694_s2, 6144 }
  0x26   :  { %s45_s28 = sshll.u32 %s3126_s26, 4  ;;  %p3025_p2 = scmp.ne.s32.totalorder %s3694_s2, %s3024_s8  ;;  %s46_s28 = int_to_ptr.vmem [resolvable:$true] %s45_s28 }
  0x27   :  { %p3028_p3 = scmp.lt.u32.totalorder %s3024_s8, %s3694_s2 }
  0x29   :  { %p3030_p4 = pnand %p3028_p3, %p3025_p2 }
  0x2b   :  { %3033 = shalt.err (!%p3030_p4)
}
  0x2c   :  { %s3034_s13 = scalar_lea.vmem %s46_s28, 6144  ;;  %p3039_p6 = scmp.lt.s32.totalorder %s46_s28, %s46_s28 }
  0x2d   :  { %p3035_p5 = scmp.ne.s32.totalorder %s46_s28, %s3034_s13  ;;  %p3040_p7 = scmp.lt.s32.totalorder %s3034_s13, %s3034_s13 }
  0x2f   :  { %p3041_p8 = por %p3040_p7, %p3039_p6 }
  0x31   :  { %p3042_p9 = pnand %p3041_p8, %p3035_p5 }
  0x33   :  { %3045 = shalt.err (!%p3042_p9)
}
  0x34   :  { %s3127_s0 = smov 384   ;;  %s3128_s27 = smov 24  }
  0x35   :  { %51 = dma.hbm_to_vmem [thread:$0]  %s3694_s2, 6144, %s46_s28, [#allocation8], %s3127_s0, %s3127_s0, %s3128_s27  }
  0x36   :  { %s3129_s16 = smov [#allocation10]   ;;  %s3046_s20 = scalar_lea.hbm %s3695_s3, 6144 }
  0x37   :  { %s57_s17 = sshll.u32 %s3129_s16, 4  ;;  %p3047_p10 = scmp.ne.s32.totalorder %s3695_s3, %s3046_s20  ;;  %s58_s17 = int_to_ptr.vmem [resolvable:$true] %s57_s17 }
  0x38   :  { %p3050_p11 = scmp.lt.u32.totalorder %s3046_s20, %s3695_s3 }
  0x3a   :  { %p3052_p12 = pnand %p3050_p11, %p3047_p10 }
  0x3c   :  { %3055 = shalt.err (!%p3052_p12)
}
  0x3d   :  { %s3056_s26 = scalar_lea.vmem %s58_s17, 6144  ;;  %p3061_p0 = scmp.lt.s32.totalorder %s58_s17, %s58_s17 }
  0x3e   :  { %p3057_p13 = scmp.ne.s32.totalorder %s58_s17, %s3056_s26  ;;  %p3062_p1 = scmp.lt.s32.totalorder %s3056_s26, %s3056_s26 }
  0x40   :  { %p3063_p2 = por %p3062_p1, %p3061_p0 }
  0x42   :  { %p3064_p3 = pnand %p3063_p2, %p3057_p13 }
  0x44   :  { %3067 = shalt.err (!%p3064_p3)
}
  0x45   :  { %63 = dma.hbm_to_vmem [thread:$0]  %s3695_s3, 6144, %s58_s17, [#allocation11], %s3127_s0, %s3127_s0, %s3128_s27  }
  0x46   :  { %3112 = dma.done.wait [#allocation5], 1024  }
  0x47   :  { %3113 = vsyncadd [#allocation5], 4294966272 }
  0x48   :  { %3114 = dma.done.wait [#allocation8], 6272  }
  0x49   :  { %3115 = vsyncadd [#allocation8], 4294961024 }
  0x4a   :  { %3116 = dma.done.wait [#allocation11], 6144  }
  0x4b   :  { %3117 = vsyncadd [#allocation11], 4294961152  ;;  %v3130_v0 = vmov 0.0   ;;  %v87_v1 = vld [vmem:[#allocation9 + $0x8] sm:$0xff]  ;;  %v90_v2 = vld [vmem:[#allocation9 + $0x20] sm:$0xff]  ;;  %vm3132_vm0 = vmmov 0  }
  0x4c   :  { %278 = vmatprep.mubr.f32.mxu0 %v3130_v0  ;;  %v86_v3 = vld [vmem:[#allocation9] sm:$0xff]  ;;  %v2343_v4 = vpack.c.bf16 %v90_v2, %v87_v1  ;;  %v89_v5 = vld [vmem:[#allocation9 + $0x18] sm:$0xff]  ;;  %v96_v7 = vld [vmem:[#allocation9 + $0x50] sm:$0xff]  ;;  %s3134_s9 = smov [#allocation13]  }
  0x4d   :  { %v93_v6 = vld [vmem:[#allocation9 + $0x38] sm:$0xff]  ;;  %v2345_v8 = vpack.c.bf16 %v89_v5, %v86_v3  ;;  %v92_v10 = vld [vmem:[#allocation9 + $0x30] sm:$0xff]  ;;  %v95_v11 = vld [vmem:[#allocation9 + $0x48] sm:$0xff]  ;;  %s1827_s10 = sshll.u32 %s3134_s9, 4  ;;  %s1828_s10 = int_to_ptr.vmem [resolvable:$true] %s1827_s10 }
  0x4e   :  { %v2347_v9 = vpack.c.bf16 %v96_v7, %v93_v6  ;;  %v99_v12 = vld [vmem:[#allocation9 + $0x68] sm:$0xff]  ;;  %2344 = vmatprep.subr.bf16.mxu0 %v2343_v4  ;;  %v102_v13 = vld [vmem:[#allocation9 + $0x80] sm:$0xff]  ;;  %v2349_v14 = vpack.c.bf16 %v95_v11, %v92_v10  ;;  %v101_v17 = vld [vmem:[#allocation9 + $0x78] sm:$0xff] }
  0x4f   :  { %2346 = vmatpush1.bf16.msra.mxu0 %v2345_v8  ;;  %v2351_v15 = vpack.c.bf16 %v102_v13, %v99_v12  ;;  %v98_v16 = vld [vmem:[#allocation9 + $0x60] sm:$0xff]  ;;  %v105_v18 = vld [vmem:[#allocation9 + $0x98] sm:$0xff]  ;;  %v108_v19 = vld [vmem:[#allocation9 + $0xb0] sm:$0xff] }
  0x50   :  { %2348 = vmatprep.subr.bf16.mxu0 %v2347_v9  ;;  %v2353_v20 = vpack.c.bf16 %v101_v17, %v98_v16  ;;  %v104_v21 = vld [vmem:[#allocation9 + $0x90] sm:$0xff]  ;;  %v2355_v22 = vpack.c.bf16 %v108_v19, %v105_v18  ;;  %v107_v23 = vld [vmem:[#allocation9 + $0xa8] sm:$0xff]  ;;  %v114_v27 = vld [vmem:[#allocation9 + $0xe0] sm:$0xff] }
  0x51   :  { %v88_v24 = vld [vmem:[#allocation9 + $0x10] sm:$0xff]  ;;  %v91_v25 = vld [vmem:[#allocation9 + $0x28] sm:$0xff]  ;;  %v94_v29 = vld [vmem:[#allocation9 + $0x40] sm:$0xff]  ;;  %v2357_v31 = vpack.c.bf16 %v107_v23, %v104_v21 }
  0x52   :  { %v111_v26 = vld [vmem:[#allocation9 + $0xc8] sm:$0xff]  ;;  %v2375_v28 = vpack.c.bf16 %v91_v25, %v88_v24  ;;  %v97_v30 = vld [vmem:[#allocation9 + $0x58] sm:$0xff]  ;;  %v110_v32 = vld [vmem:[#allocation9 + $0xc0] sm:$0xff] }
  0x53   :  { %2350 = vmatpush1.bf16.msra.mxu0 %v2349_v14  ;;  %v2379_v33 = vpack.c.bf16 %v97_v30, %v94_v29  ;;  %v2359_v34 = vpack.c.bf16 %v114_v27, %v111_v26  ;;  %v113_v35 = vld [vmem:[#allocation9 + $0xd8] sm:$0xff]  ;;  %v100_v37 = vld [vmem:[#allocation9 + $0x70] sm:$0xff]  ;;  %v103_v40 = vld [vmem:[#allocation9 + $0x88] sm:$0xff] }
  0x54   :  { %2352 = vmatprep.subr.bf16.mxu0 %v2351_v15  ;;  %2376 = vmatprep.subr.bf16.mxu1 %v2375_v28  ;;  %v3234_v36 = vld [vmem:[#allocation4] sm:$0xff]  ;;  %v120_v39 = vld [vmem:[#allocation9 + $0x110] sm:$0xff]  ;;  %v2383_v41 = vpack.c.bf16 %v103_v40, %v100_v37  ;;  %v2361_v42 = vpack.c.bf16 %v113_v35, %v110_v32  ;;  %v106_v43 = vld [vmem:[#allocation9 + $0xa0] sm:$0xff]  ;;  %v3131_v40 = vmov 0.0|0.0  }
  0x55   :  { %2378 = vmatpush3.bf16.msra.mxu1 %v2375_v28  ;;  %v117_v38 = vld [vmem:[#allocation9 + $0xf8] sm:$0xff]  ;;  %2051 = vmatprep.mubr.f32.mxu1 %v3234_v36  ;;  %v116_v46 = vld [vmem:[#allocation9 + $0xf0] sm:$0xff]  ;;  %v119_v47 = vld [vmem:[#allocation9 + $0x108] sm:$0xff] }
  0x56   :  { %2380 = vmatprep.subr.bf16.mxu1 %v2379_v33  ;;  %v109_v44 = vld [vmem:[#allocation9 + $0xb8] sm:$0xff]  ;;  %v2363_v45 = vpack.c.bf16 %v120_v39, %v117_v38  ;;  %v123_v48 = vld [vmem:[#allocation9 + $0x128] sm:$0xff]  ;;  %v126_v49 = vld [vmem:[#allocation9 + $0x140] sm:$0xff]  ;;  %v2365_v53 = vpack.c.bf16 %v119_v47, %v116_v46 }
  0x57   :  { %2354 = vmatpush1.bf16.msra.mxu0 %v2353_v20  ;;  %v2387_v50 = vpack.c.bf16 %v109_v44, %v106_v43  ;;  %v112_v51 = vld [vmem:[#allocation9 + $0xd0] sm:$0xff]  ;;  %v115_v52 = vld [vmem:[#allocation9 + $0xe8] sm:$0xff]  ;;  %v2367_v54 = vpack.c.bf16 %v126_v49, %v123_v48  ;;  %v122_v55 = vld [vmem:[#allocation9 + $0x120] sm:$0xff] }
  0x58   :  { %2356 = vmatprep.subr.bf16.mxu0 %v2355_v22  ;;  %v125_v56 = vld [vmem:[#allocation9 + $0x138] sm:$0xff]  ;;  %v132_v58 = vld [vmem:[#allocation9 + $0x170] sm:$0xff]  ;;  %v2391_v59 = vpack.c.bf16 %v115_v52, %v112_v51  ;;  %v118_v60 = vld [vmem:[#allocation9 + $0x100] sm:$0xff] }
  0x59   :  { %2382 = vmatpush3.bf16.msra.mxu1 %v2379_v33  ;;  %v129_v57 = vld [vmem:[#allocation9 + $0x158] sm:$0xff]  ;;  %v2369_v62 = vpack.c.bf16 %v125_v56, %v122_v55  ;;  %v128_v1 = vld [vmem:[#allocation9 + $0x150] sm:$0xff]  ;;  %v131_v2 = vld [vmem:[#allocation9 + $0x168] sm:$0xff] }
  0x5a   :  { %2384 = vmatprep.subr.bf16.mxu1 %v2383_v41  ;;  %v121_v61 = vld [vmem:[#allocation9 + $0x118] sm:$0xff]  ;;  %v2371_v63 = vpack.c.bf16 %v132_v58, %v129_v57  ;;  %v135_v3 = vld [vmem:[#allocation10 + $0x8] sm:$0xff]  ;;  %v138_v4 = vld [vmem:[#allocation10 + $0x20] sm:$0xff]  ;;  %v2373_v8 = vpack.c.bf16 %v131_v2, %v128_v1 }
  0x5b   :  { %2358 = vmatpush1.bf16.msra.mxu0 %v2357_v31  ;;  %v2395_v5 = vpack.c.bf16 %v121_v61, %v118_v60  ;;  %v124_v6 = vld [vmem:[#allocation9 + $0x130] sm:$0xff]  ;;  %v127_v7 = vld [vmem:[#allocation9 + $0x148] sm:$0xff]  ;;  %v3237_v9 = vpack.c.bf16 %v138_v4, %v135_v3  ;;  %v134_v10 = vld [vmem:[#allocation10] sm:$0xff] }
  0x5c   :  { %2360 = vmatprep.subr.bf16.mxu0 %v2359_v34  ;;  %v137_v11 = vld [vmem:[#allocation10 + $0x18] sm:$0xff]  ;;  %v144_v13 = vld [vmem:[#allocation10 + $0x50] sm:$0xff]  ;;  %v2399_v14 = vpack.c.bf16 %v127_v7, %v124_v6  ;;  %v130_v15 = vld [vmem:[#allocation9 + $0x160] sm:$0xff] }
  0x5d   :  { %2386 = vmatpush3.bf16.msra.mxu1 %v2383_v41  ;;  %v141_v12 = vld [vmem:[#allocation10 + $0x38] sm:$0xff]  ;;  %v3239_v17 = vpack.c.bf16 %v137_v11, %v134_v10  ;;  %v140_v19 = vld [vmem:[#allocation10 + $0x30] sm:$0xff]  ;;  %v143_v20 = vld [vmem:[#allocation10 + $0x48] sm:$0xff] }
  0x5e   :  { %2388 = vmatprep.subr.bf16.mxu1 %v2387_v50  ;;  %v133_v16 = vld [vmem:[#allocation9 + $0x178] sm:$0xff]  ;;  %v3242_v18 = vpack.c.bf16 %v144_v13, %v141_v12  ;;  %v147_v21 = vld [vmem:[#allocation10 + $0x68] sm:$0xff]  ;;  %v150_v22 = vld [vmem:[#allocation10 + $0x80] sm:$0xff]  ;;  %v3247_v25 = vpack.c.bf16 %v143_v20, %v140_v19 }
  0x5f   :  { %2362 = vmatpush1.bf16.msra.mxu0 %v2361_v42  ;;  %v2403_v23 = vpack.c.bf16 %v133_v16, %v130_v15  ;;  %v191_v24 = vld [vmem:[#allocation4 + $0x8] sm:$0xff]  ;;  %v3250_v26 = vpack.c.bf16 %v150_v22, %v147_v21  ;;  %v149_v28 = vld [vmem:[#allocation10 + $0x78] sm:$0xff]  ;;  %v156_v30 = vld [vmem:[#allocation10 + $0xb0] sm:$0xff] }
  0x60   :  { %2364 = vmatprep.subr.bf16.mxu0 %v2363_v45  ;;  %v146_v27 = vld [vmem:[#allocation10 + $0x60] sm:$0xff]  ;;  %v153_v29 = vld [vmem:[#allocation10 + $0x98] sm:$0xff]  ;;  %v136_v31 = vld [vmem:[#allocation10 + $0x10] sm:$0xff] }
  0x61   :  { %2390 = vmatpush3.bf16.msra.mxu1 %v2387_v50  ;;  %v139_v32 = vld [vmem:[#allocation10 + $0x28] sm:$0xff]  ;;  %v3254_v34 = vpack.c.bf16 %v149_v28, %v146_v27  ;;  %v3257_v35 = vpack.c.bf16 %v156_v30, %v153_v29  ;;  %v162_v39 = vld [vmem:[#allocation10 + $0xe0] sm:$0xff]  ;;  %v145_v43 = vld [vmem:[#allocation10 + $0x58] sm:$0xff] }
  0x62   :  { %2392 = vmatprep.subr.bf16.mxu1 %v2391_v59  ;;  %v192_v33 = vld [vmem:[#allocation4 + $0x10] sm:$0xff]  ;;  %v3260_v41 = vpack.c.bf16 %v139_v32, %v136_v31  ;;  %v142_v42 = vld [vmem:[#allocation10 + $0x40] sm:$0xff]  ;;  %v193_v44 = vld [vmem:[#allocation4 + $0x18] sm:$0xff] }
  0x63   :  { %2366 = vmatpush1.bf16.msra.mxu0 %v2365_v53  ;;  %v155_v37 = vld [vmem:[#allocation10 + $0xa8] sm:$0xff]  ;;  %v158_v47 = vld [vmem:[#allocation10 + $0xc0] sm:$0xff]  ;;  %v161_v48 = vld [vmem:[#allocation10 + $0xd8] sm:$0xff]  ;;  %v3270_v51 = vpack.c.bf16 %v145_v43, %v142_v42 }
  0x64   :  { %2368 = vmatprep.subr.bf16.mxu0 %v2367_v54  ;;  %v159_v38 = vld [vmem:[#allocation10 + $0xc8] sm:$0xff]  ;;  %v165_v49 = vld [vmem:[#allocation10 + $0xf8] sm:$0xff]  ;;  %v168_v50 = vld [vmem:[#allocation10 + $0x110] sm:$0xff]  ;;  %v3275_v55 = vpack.c.bf16 %v161_v48, %v158_v47 }
  0x65   :  { %2394 = vmatpush3.bf16.msra.mxu1 %v2391_v59  ;;  %v3267_v46 = vpack.c.bf16 %v162_v39, %v159_v38  ;;  %v148_v52 = vld [vmem:[#allocation10 + $0x70] sm:$0xff]  ;;  %v151_v53 = vld [vmem:[#allocation10 + $0x88] sm:$0xff]  ;;  %v194_v54 = vld [vmem:[#allocation4 + $0x20] sm:$0xff]  ;;  %v3278_v56 = vpack.c.bf16 %v168_v50, %v165_v49 }
  0x66   :  { %2396 = vmatprep.subr.bf16.mxu1 %v2395_v5  ;;  %v164_v57 = vld [vmem:[#allocation10 + $0xf0] sm:$0xff]  ;;  %v167_v58 = vld [vmem:[#allocation10 + $0x108] sm:$0xff]  ;;  %v174_v60 = vld [vmem:[#allocation10 + $0x140] sm:$0xff]  ;;  %v3281_v61 = vpack.c.bf16 %v151_v53, %v148_v52 }
  0x67   :  { %2370 = vmatpush1.bf16.msra.mxu0 %v2369_v62  ;;  %v171_v59 = vld [vmem:[#allocation10 + $0x128] sm:$0xff]  ;;  %v154_v62 = vld [vmem:[#allocation10 + $0xa0] sm:$0xff]  ;;  %v3286_v2 = vpack.c.bf16 %v167_v58, %v164_v57  ;;  %v173_v6 = vld [vmem:[#allocation10 + $0x138] sm:$0xff] }
  0x68   :  { %2372 = vmatprep.subr.bf16.mxu0 %v2371_v63  ;;  %v157_v63 = vld [vmem:[#allocation10 + $0xb8] sm:$0xff]  ;;  %v195_v1 = vld [vmem:[#allocation4 + $0x28] sm:$0xff]  ;;  %v196_v3 = vld [vmem:[#allocation4 + $0x30] sm:$0xff]  ;;  %v3289_v4 = vpack.c.bf16 %v174_v60, %v171_v59 }
  0x69   :  { %2398 = vmatpush3.bf16.msra.mxu1 %v2395_v5  ;;  %v170_v5 = vld [vmem:[#allocation10 + $0x120] sm:$0xff]  ;;  %v177_v7 = vld [vmem:[#allocation10 + $0x158] sm:$0xff]  ;;  %v3292_v10 = vpack.c.bf16 %v157_v63, %v154_v62  ;;  %v160_v11 = vld [vmem:[#allocation10 + $0xd0] sm:$0xff] }
  0x6a   :  { %2400 = vmatprep.subr.bf16.mxu1 %v2399_v14  ;;  %v163_v12 = vld [vmem:[#allocation10 + $0xe8] sm:$0xff]  ;;  %v3297_v13 = vpack.c.bf16 %v173_v6, %v170_v5  ;;  %v176_v16 = vld [vmem:[#allocation10 + $0x150] sm:$0xff]  ;;  %v166_v21 = vld [vmem:[#allocation10 + $0x100] sm:$0xff] }
  0x6b   :  { %2374 = vmatpush1.bf16.msra.mxu0 %v2373_v8  ;;  %v180_v8 = vld [vmem:[#allocation10 + $0x170] sm:$0xff]  ;;  %v179_v19 = vld [vmem:[#allocation10 + $0x168] sm:$0xff]  ;;  %v3303_v20 = vpack.c.bf16 %v163_v12, %v160_v11  ;;  %v169_v22 = vld [vmem:[#allocation10 + $0x118] sm:$0xff] }
  0x6c   :  { %2408 = vmatprep.subr.bf16.mxu0 %v3237_v9  ;;  %v3300_v15 = vpack.c.bf16 %v180_v8, %v177_v7  ;;  %v172_v27 = vld [vmem:[#allocation10 + $0x130] sm:$0xff]  ;;  %v175_v28 = vld [vmem:[#allocation10 + $0x148] sm:$0xff]  ;;  %v3319_v29 = vld [vmem:[#allocation7] sm:$0xff] }
  0x6d   :  { %2402 = vmatpush3.bf16.msra.mxu1 %v2399_v14  ;;  %v197_v14 = vld [vmem:[#allocation4 + $0x38] sm:$0xff]  ;;  %v3323_v30 = vpack.c.bf16 %v175_v28, %v172_v27  ;;  %v178_v31 = vld [vmem:[#allocation10 + $0x160] sm:$0xff]  ;;  %v181_v32 = vld [vmem:[#allocation10 + $0x178] sm:$0xff] }
  0x6e   :  { %279 = vmatmul.mubr.f32.vlgmr.msra.gmra.mrb[0].mxu0 %v3234_v36  ;;  %2404 = vmatprep.subr.bf16.mxu1 %v2403_v23  ;;  %v152_v36 = vld [vmem:[#allocation10 + $0x90] sm:$0xff]  ;;  %v182_v39 = vld [vmem:[%s3696_s4] sm:$0x7] }
  0x6f   :  { %2410 = vmatpush1.bf16.msra.mxu0 %v3239_v17  ;;  %284 = vmatprep.mubr.f32.mxu0 %v3130_v0  ;;  %v3264_v45 = vpack.c.bf16 %v155_v37, %v152_v36  ;;  %v199_v36 = vlaneseq }
  0x70   :  { %2412 = vmatprep.subr.bf16.mxu0 %v3242_v18 }
  0x71   :  { %2406 = vmatpush3.bf16.msra.mxu1 %v2403_v23  ;;  %v3310_v23 = vpack.c.bf16 %v179_v19, %v176_v16  ;;  %v200_v37 = vshrl.u32 %v199_v36, 7 }
  0x72   :  { %285 = vmatmul.mubr.f32.gmra.mrb[2].mxu0 %v191_v24  ;;  %2439 = vmatprep.subr.bf16.mxu1 %v3131_v40 }
  0x73   :  { %2414 = vmatpush1.bf16.msra.mxu0 %v3247_v25  ;;  %290 = vmatprep.mubr.f32.mxu0 %v3130_v0  ;;  %v209_v38 = vsub.s32 2, %v200_v37 }
  0x74   :  { %2416 = vmatprep.subr.bf16.mxu0 %v3250_v26  ;;  %2052 = vmatmul.mubr.f32.vlgmr.msra.gmra.mrb[0].mxu1 %v191_v24  ;;  %v3314_v24 = vpack.c.bf16 %v169_v22, %v166_v21 }
  0x75   :  { %2441 = vmatpush3.bf16.msra.mxu1 %v3260_v41  ;;  %2054 = vmatprep.mubr.f32.mxu1 %v192_v33  ;;  %v210_v42 = vrot.slane %v182_v39, %v209_v38 }
  0x76   :  { %291 = vmatmul.mubr.f32.gmra.mrb[4].mxu0 %v192_v33  ;;  %2442 = vmatprep.subr.bf16.mxu1 %v3131_v40  ;;  %v3331_v33 = vpack.c.bf16 %v181_v32, %v178_v31  ;;  %v3395_v31 = vld [vmem:[%s3697_s5] ss:$0 sm:$0xff]  ;;  %s3133_s5 = smov [#allocation12]  }
  0x77   :  { %2418 = vmatpush1.bf16.msra.mxu0 %v3254_v34  ;;  %296 = vmatprep.mubr.f32.mxu0 %v3130_v0  ;;  %s1814_s8 = sshll.u32 %s3133_s5, 4  ;;  %s1815_s8 = int_to_ptr.vmem [resolvable:$true] %s1814_s8 }
  0x78   :  { %2420 = vmatprep.subr.bf16.mxu0 %v3257_v35  ;;  %2055 = vmatmul.mubr.f32.gmra.mrb[2].mxu1 %v193_v44  ;;  %s3068_s11 = scalar_lea.vmem %s1815_s8, 1024  ;;  %p3073_p5 = scmp.lt.s32.totalorder %s1815_s8, %s1815_s8 }
  0x79   :  { %2444 = vmatpush3.bf16.msra.mxu1 %v3270_v51  ;;  %2057 = vmatprep.mubr.f32.mxu1 %v194_v54  ;;  %p3069_p4 = scmp.ne.s32.totalorder %s1815_s8, %s3068_s11  ;;  %p3074_p6 = scmp.lt.s32.totalorder %s3068_s11, %s3068_s11 }
  0x7a   :  { %297 = vmatmul.mubr.f32.gmra.mrb[6].mxu0 %v193_v44  ;;  %2445 = vmatprep.subr.bf16.mxu1 %v3131_v40 }
  0x7b   :  { %2422 = vmatpush1.bf16.msra.mxu0 %v3264_v45  ;;  %302 = vmatprep.mubr.f32.mxu0 %v3130_v0  ;;  %p3075_p7 = por %p3074_p6, %p3073_p5 }
  0x7c   :  { %2424 = vmatprep.subr.bf16.mxu0 %v3267_v46  ;;  %2058 = vmatmul.mubr.f32.gmra.mrb[4].mxu1 %v195_v1 }
  0x7d   :  { %2447 = vmatpush3.bf16.msra.mxu1 %v3281_v61  ;;  %2060 = vmatprep.mubr.f32.mxu1 %v196_v3  ;;  %p3076_p8 = pnand %p3075_p7, %p3069_p4 }
  0x7e   :  { %303 = vmatmul.mubr.f32.gmra.mrb[8].mxu0 %v194_v54  ;;  %2448 = vmatprep.subr.bf16.mxu1 %v3131_v40 }
  0x7f   :  { %2426 = vmatpush1.bf16.msra.mxu0 %v3275_v55  ;;  %308 = vmatprep.mubr.f32.mxu0 %v3130_v0 }
  0x80   :  { %2428 = vmatprep.subr.bf16.mxu0 %v3278_v56  ;;  %2061 = vmatmul.mubr.f32.gmra.mrb[6].mxu1 %v197_v14 }
  0x81   :  { %2450 = vmatpush3.bf16.msra.mxu1 %v3292_v10  ;;  %2095 = vmatprep.mubr.msk.f32.mxu1 %vm3132_vm0, %v3130_v0 }
  0x82   :  { %309 = vmatmul.mubr.f32.gmra.mrb[10].mxu0 %v195_v1  ;;  %2451 = vmatprep.subr.bf16.mxu1 %v3131_v40  ;;  %v201_v1 = vsub.s32 0, %v200_v37 }
  0x83   :  { %2430 = vmatpush1.bf16.msra.mxu0 %v3286_v2  ;;  %314 = vmatprep.mubr.f32.mxu0 %v3130_v0 }
  0x84   :  { %2432 = vmatprep.subr.bf16.mxu0 %v3289_v4  ;;  %v3386_v5 = vrot.slane %v182_v39, %v201_v1 }
  0x85   :  { %2453 = vmatpush3.bf16.msra.mxu1 %v3303_v20 }
  0x86   :  { %315 = vmatmul.mubr.f32.gmra.mrb[12].mxu0 %v196_v3  ;;  %2454 = vmatprep.subr.bf16.mxu1 %v3131_v40  ;;  %v205_v3 = vsub.s32 1, %v200_v37 }
  0x87   :  { %2434 = vmatpush1.bf16.msra.mxu0 %v3297_v13  ;;  %320 = vmatprep.mubr.f32.mxu0 %v3130_v0 }
  0x88   :  { %2436 = vmatprep.subr.bf16.mxu0 %v3300_v15  ;;  %v3388_v7 = vrot.slane %v182_v39, %v205_v3 }
  0x89   :  { %2456 = vmatpush3.bf16.msra.mxu1 %v3314_v24 }
  0x8a   :  { %321 = vmatmul.mubr.f32.gmra.mrb[14].mxu0 %v197_v14  ;;  %2457 = vmatprep.subr.bf16.mxu1 %v3131_v40 }
  0x8b   :  { %2438 = vmatpush1.bf16.msra.mxu0 %v3310_v23  ;;  %524 = vmatprep.mubr.f32.mxu0 %v3130_v0 }
  0x8c   :  { %2464 = vmatprep.subr.bf16.mxu0 %v3237_v9 }
  0x8d   :  { %2459 = vmatpush3.bf16.msra.mxu1 %v3323_v30 }
  0x8e   :  { %525 = vmatmul.mubr.f32.vlgmr.msra.gmra.mrb[0].mxu0 %v3319_v29  ;;  %2460 = vmatprep.subr.bf16.mxu1 %v3131_v40 }
  0x8f   :  { %2466 = vmatpush1.bf16.msra.mxu0 %v3239_v17  ;;  %692 = vmatprep.mubr.f32.mxu0 %v3130_v0 }
  0x90   :  { %2468 = vmatprep.subr.bf16.mxu0 %v3242_v18 }
  0x91   :  { %2462 = vmatpush3.bf16.msra.mxu1 %v3331_v33 }
  0x92   :  { %2495 = vmatprep.subr.bf16.mxu1 %v3131_v40 }
  0x93   :  { %2470 = vmatpush1.bf16.msra.mxu0 %v3247_v25 }
  0x94   :  { %2472 = vmatprep.subr.bf16.mxu0 %v3250_v26  ;;  %2096 = vmatmul.mubr.f32.vlgmr.msra.gmra.mrb[8].mxu1 %v3319_v29 }
  0x95   :  { %2497 = vmatpush3.bf16.msra.mxu1 %v3260_v41  ;;  %2130 = vmatprep.mubr.msk.f32.mxu1 %vm3132_vm0, %v3130_v0 }
  0x96   :  { %2498 = vmatprep.subr.bf16.mxu1 %v3131_v40 }
  0x97   :  { %2474 = vmatpush1.bf16.msra.mxu0 %v3254_v34 }
  0x98   :  { %2476 = vmatprep.subr.bf16.mxu0 %v3257_v35 }
  0x99   :  { %2500 = vmatpush3.bf16.msra.mxu1 %v3270_v51 }
  0x9a   :  { %2501 = vmatprep.subr.bf16.mxu1 %v3131_v40 }
  0x9b   :  { %2478 = vmatpush1.bf16.msra.mxu0 %v3264_v45 }
  0x9c   :  { %2480 = vmatprep.subr.bf16.mxu0 %v3267_v46 }
  0x9d   :  { %2503 = vmatpush3.bf16.msra.mxu1 %v3281_v61 }
  0x9e   :  { %2504 = vmatprep.subr.bf16.mxu1 %v3131_v40 }
  0x9f   :  { %2482 = vmatpush1.bf16.msra.mxu0 %v3275_v55 }
  0xa0   :  { %2484 = vmatprep.subr.bf16.mxu0 %v3278_v56 }
  0xa1   :  { %2506 = vmatpush3.bf16.msra.mxu1 %v3292_v10 }
  0xa2   :  { %2507 = vmatprep.subr.bf16.mxu1 %v3131_v40 }
  0xa3   :  { %2486 = vmatpush1.bf16.msra.mxu0 %v3286_v2 }
  0xa4   :  { %2488 = vmatprep.subr.bf16.mxu0 %v3289_v4 }
  0xa5   :  { %2509 = vmatpush3.bf16.msra.mxu1 %v3303_v20 }
  0xa6   :  { %2510 = vmatprep.subr.bf16.mxu1 %v3131_v40 }
  0xa7   :  { %2490 = vmatpush1.bf16.msra.mxu0 %v3297_v13 }
  0xa8   :  { %2492 = vmatprep.subr.bf16.mxu0 %v3300_v15 }
  0xa9   :  { %2512 = vmatpush3.bf16.msra.mxu1 %v3314_v24 }
  0xaa   :  { %2513 = vmatprep.subr.bf16.mxu1 %v3131_v40 }
  0xab   :  { %2494 = vmatpush1.bf16.msra.mxu0 %v3310_v23 }
  0xac   :  { %2520 = vmatprep.subr.bf16.mxu0 %v3237_v9 }
  0xad   :  { %2515 = vmatpush3.bf16.msra.mxu1 %v3323_v30 }
  0xae   :  { %2516 = vmatprep.subr.bf16.mxu1 %v3131_v40 }
  0xb1   :  { %2518 = vmatpush3.bf16.msra.mxu1 %v3331_v33 }
  0xb2   :  { %2551 = vmatprep.subr.bf16.mxu1 %v3131_v40 }
 0x147   :  { %v2053_v43 = vpop.f32.mrb[0].mxu1 }
 0x148   :  { %v3372_v44 = vadd.f32 %v2053_v43, %v210_v42  ;;  %v393_v47 = vpop.f32.mrb[1].mxu1 }
 0x149   :  { %v394_v38 = vadd.f32 %v393_v47, %v210_v42 }
 0x14b   :  { %v2056_v48 = vpop.f32.mrb[2].mxu1 }
 0x14c   :  { %v3374_v49 = vadd.f32 %v2056_v48, %v210_v42  ;;  %v403_v50 = vpop.f32.mrb[3].mxu1 }
 0x14d   :  { %v3376_v52 = vadd.f32 %v403_v50, %v210_v42 }
 0x14f   :  { %v2059_v53 = vpop.f32.mrb[4].mxu1 }
 0x150   :  { %v3378_v54 = vadd.f32 %v2059_v53, %v210_v42  ;;  %v413_v57 = vpop.f32.mrb[5].mxu1 }
 0x151   :  { %v3380_v58 = vadd.f32 %v413_v57, %v210_v42 }
 0x153   :  { %v2062_v59 = vpop.f32.mrb[6].mxu1 }
 0x154   :  { %v3382_v60 = vadd.f32 %v2062_v59, %v210_v42  ;;  %v423_v62 = vpop.f32.mrb[7].mxu1 }
 0x155   :  { %v3384_v63 = vadd.f32 %v423_v62, %v210_v42 }
 0x161   :  { %v526_v6 = vpop.f32.mrb[0].mxu0 }
 0x162   :  { %v2855_v8 = vadd.f32 %v526_v6, %v3386_v5  ;;  %v528_v11 = vpop.f32.mrb[1].mxu0 }
 0x163   :  { %v2856_v14 = vadd.f32 %v528_v11, %v3388_v7 }
 0x164   :  { %v1843_v12 = vmul.f32 -1.442695, %v2855_v8 }
 0x165   :  { %v1844_v16 = vmul.f32 -1.442695, %v2856_v14 }
 0x166   :  { %2900 = vpow2.f32 %v1843_v12 }
 0x167   :  { %v597_v19 = vpop.f32.mrb[8].mxu1  ;;  %2902 = vpow2.f32 %v1844_v16 }
 0x168   :  { %v2097_v21 = vpop.f32.mrb[9].mxu1  ;;  %v615_v36 = vadd.f32 %v3395_v31, %v597_v19 }
 0x170   :  { %v2901_v22 = vpop.eup %2900 }
 0x171   :  { %v605_v27 = vadd.f32 1.0, %v2901_v22  ;;  %v2903_v28 = vpop.eup %2902 }
 0x172   :  { %v612_v32 = vadd.f32 1.0, %v2903_v28 }
 0x173   :  { %2904 = vrcp.f32 %v605_v27 }
 0x174   :  { %2906 = vrcp.f32 %v612_v32 }
 0x17d   :  { %v2905_v37 = vpop.eup %2904 }
 0x17e   :  { %v616_v39 = vmul.f32 %v2905_v37, %v615_v36  ;;  %v2907_v48 = vpop.eup %2906 }
 0x17f   :  { %v619_v50 = vsub.f32 1.0, %v2907_v48  ;;  %v621_v59 = vmul.f32 %v2907_v48, %v3319_v29 }
 0x180   :  { %v617_v43 = vadd.f32 %v616_v39, %v394_v38 }
 0x182   :  { %2908 = vtanh.f32 %v617_v43 }
 0x18c   :  { %v2909_v53 = vpop.eup %2908 }
 0x18d   :  { %v620_v57 = vmul.f32 %v2909_v53, %v619_v50 }
 0x18f   :  { %v3399_v62 = vadd.f32 %v621_v59, %v620_v57 }
 0x191   :  { %623 = vst [vmem:[#allocation12] sm:$0xff] %v3399_v62  ;;  %693 = vmatmul.mubr.f32.vlgmr.msra.gmra.mrb[2].mxu0 %v3399_v62  ;;  %2131 = vmatmul.mubr.f32.vlgmr.msra.gmra.mrb[10].mxu1 %v3399_v62 }
 0x192   :  { %2522 = vmatpush1.bf16.msra.mxu0 %v3239_v17  ;;  %2553 = vmatpush3.bf16.msra.mxu1 %v3260_v41 }
 0x193   :  { %2524 = vmatprep.subr.bf16.mxu0 %v3242_v18  ;;  %2554 = vmatprep.subr.bf16.mxu1 %v3131_v40 }
 0x194   :  { %861 = vmatprep.mubr.f32.mxu0 %v3130_v0  ;;  %2165 = vmatprep.mubr.msk.f32.mxu1 %vm3132_vm0, %v3130_v0 }
 0x196   :  { %2526 = vmatpush1.bf16.msra.mxu0 %v3247_v25  ;;  %2556 = vmatpush3.bf16.msra.mxu1 %v3270_v51 }
 0x197   :  { %2528 = vmatprep.subr.bf16.mxu0 %v3250_v26  ;;  %2557 = vmatprep.subr.bf16.mxu1 %v3131_v40 }
 0x19a   :  { %2530 = vmatpush1.bf16.msra.mxu0 %v3254_v34  ;;  %2559 = vmatpush3.bf16.msra.mxu1 %v3281_v61 }
 0x19b   :  { %2532 = vmatprep.subr.bf16.mxu0 %v3257_v35  ;;  %2560 = vmatprep.subr.bf16.mxu1 %v3131_v40 }
 0x19e   :  { %2534 = vmatpush1.bf16.msra.mxu0 %v3264_v45  ;;  %2562 = vmatpush3.bf16.msra.mxu1 %v3292_v10 }
 0x19f   :  { %2536 = vmatprep.subr.bf16.mxu0 %v3267_v46  ;;  %2563 = vmatprep.subr.bf16.mxu1 %v3131_v40 }
 0x1a2   :  { %2538 = vmatpush1.bf16.msra.mxu0 %v3275_v55  ;;  %2565 = vmatpush3.bf16.msra.mxu1 %v3303_v20 }
 0x1a3   :  { %2540 = vmatprep.subr.bf16.mxu0 %v3278_v56  ;;  %2566 = vmatprep.subr.bf16.mxu1 %v3131_v40 }
 0x1a6   :  { %2542 = vmatpush1.bf16.msra.mxu0 %v3286_v2  ;;  %2568 = vmatpush3.bf16.msra.mxu1 %v3314_v24 }
 0x1a7   :  { %2544 = vmatprep.subr.bf16.mxu0 %v3289_v4  ;;  %2569 = vmatprep.subr.bf16.mxu1 %v3131_v40 }
 0x1aa   :  { %2546 = vmatpush1.bf16.msra.mxu0 %v3297_v13  ;;  %2571 = vmatpush3.bf16.msra.mxu1 %v3323_v30 }
 0x1ab   :  { %2548 = vmatprep.subr.bf16.mxu0 %v3300_v15  ;;  %2572 = vmatprep.subr.bf16.mxu1 %v3131_v40 }
 0x1ae   :  { %2550 = vmatpush1.bf16.msra.mxu0 %v3310_v23  ;;  %2574 = vmatpush3.bf16.msra.mxu1 %v3331_v33 }
 0x1af   :  { %2576 = vmatprep.subr.bf16.mxu0 %v3237_v9  ;;  %2607 = vmatprep.subr.bf16.mxu1 %v3131_v40 }
 0x264   :  { %v694_v29 = vpop.f32.mrb[2].mxu0  ;;  %v765_v42 = vpop.f32.mrb[10].mxu1 }
 0x265   :  { %v2857_v47 = vadd.f32 %v694_v29, %v3386_v5  ;;  %v696_v1 = vpop.f32.mrb[3].mxu0  ;;  %v2132_v3 = vpop.f32.mrb[11].mxu1  ;;  %v783_v21 = vadd.f32 %v3395_v31, %v765_v42 }
 0x266   :  { %v2858_v8 = vadd.f32 %v696_v1, %v3388_v7 }
 0x267   :  { %v1845_v6 = vmul.f32 -1.442695, %v2857_v47 }
 0x268   :  { %v1846_v11 = vmul.f32 -1.442695, %v2858_v8 }
 0x269   :  { %2910 = vpow2.f32 %v1845_v6 }
 0x26a   :  { %2912 = vpow2.f32 %v1846_v11 }
 0x273   :  { %v2911_v12 = vpop.eup %2910 }
 0x274   :  { %v773_v14 = vadd.f32 1.0, %v2911_v12  ;;  %v2913_v16 = vpop.eup %2912 }
 0x275   :  { %v780_v19 = vadd.f32 1.0, %v2913_v16 }
 0x276   :  { %2914 = vrcp.f32 %v773_v14 }
 0x277   :  { %2916 = vrcp.f32 %v780_v19 }
 0x280   :  { %v2915_v22 = vpop.eup %2914 }
 0x281   :  { %v784_v27 = vmul.f32 %v2915_v22, %v783_v21  ;;  %v2917_v32 = vpop.eup %2916 }
 0x282   :  { %v787_v36 = vsub.f32 1.0, %v2917_v32  ;;  %v789_v39 = vmul.f32 %v2917_v32, %v3399_v62 }
 0x283   :  { %v785_v28 = vadd.f32 %v784_v27, %v3372_v44 }
 0x285   :  { %2918 = vtanh.f32 %v785_v28 }
 0x28f   :  { %v2919_v37 = vpop.eup %2918 }
 0x290   :  { %v788_v38 = vmul.f32 %v2919_v37, %v787_v36 }
 0x292   :  { %v3444_v43 = vadd.f32 %v789_v39, %v788_v38 }
 0x294   :  { %792 = vst [vmem:[#allocation12 + $0x8] sm:$0xff] %v3444_v43  ;;  %862 = vmatmul.mubr.f32.vlgmr.msra.gmra.mrb[4].mxu0 %v3444_v43  ;;  %2166 = vmatmul.mubr.f32.vlgmr.msra.gmra.mrb[12].mxu1 %v3444_v43 }
 0x295   :  { %2578 = vmatpush1.bf16.msra.mxu0 %v3239_v17  ;;  %2609 = vmatpush3.bf16.msra.mxu1 %v3260_v41 }
 0x296   :  { %2580 = vmatprep.subr.bf16.mxu0 %v3242_v18  ;;  %2610 = vmatprep.subr.bf16.mxu1 %v3131_v40 }
 0x297   :  { %1030 = vmatprep.mubr.f32.mxu0 %v3130_v0  ;;  %2200 = vmatprep.mubr.msk.f32.mxu1 %vm3132_vm0, %v3130_v0 }
 0x299   :  { %2582 = vmatpush1.bf16.msra.mxu0 %v3247_v25  ;;  %2612 = vmatpush3.bf16.msra.mxu1 %v3270_v51 }
 0x29a   :  { %2584 = vmatprep.subr.bf16.mxu0 %v3250_v26  ;;  %2613 = vmatprep.subr.bf16.mxu1 %v3131_v40 }
 0x29d   :  { %2586 = vmatpush1.bf16.msra.mxu0 %v3254_v34  ;;  %2615 = vmatpush3.bf16.msra.mxu1 %v3281_v61 }
 0x29e   :  { %2588 = vmatprep.subr.bf16.mxu0 %v3257_v35  ;;  %2616 = vmatprep.subr.bf16.mxu1 %v3131_v40 }
 0x2a1   :  { %2590 = vmatpush1.bf16.msra.mxu0 %v3264_v45  ;;  %2618 = vmatpush3.bf16.msra.mxu1 %v3292_v10 }
 0x2a2   :  { %2592 = vmatprep.subr.bf16.mxu0 %v3267_v46  ;;  %2619 = vmatprep.subr.bf16.mxu1 %v3131_v40 }
 0x2a5   :  { %2594 = vmatpush1.bf16.msra.mxu0 %v3275_v55  ;;  %2621 = vmatpush3.bf16.msra.mxu1 %v3303_v20 }
 0x2a6   :  { %2596 = vmatprep.subr.bf16.mxu0 %v3278_v56  ;;  %2622 = vmatprep.subr.bf16.mxu1 %v3131_v40 }
 0x2a9   :  { %2598 = vmatpush1.bf16.msra.mxu0 %v3286_v2  ;;  %2624 = vmatpush3.bf16.msra.mxu1 %v3314_v24 }
 0x2aa   :  { %2600 = vmatprep.subr.bf16.mxu0 %v3289_v4  ;;  %2625 = vmatprep.subr.bf16.mxu1 %v3131_v40 }
 0x2ad   :  { %2602 = vmatpush1.bf16.msra.mxu0 %v3297_v13  ;;  %2627 = vmatpush3.bf16.msra.mxu1 %v3323_v30 }
 0x2ae   :  { %2604 = vmatprep.subr.bf16.mxu0 %v3300_v15  ;;  %2628 = vmatprep.subr.bf16.mxu1 %v3131_v40 }
 0x2b1   :  { %2606 = vmatpush1.bf16.msra.mxu0 %v3310_v23  ;;  %2630 = vmatpush3.bf16.msra.mxu1 %v3331_v33 }
 0x2b2   :  { %2632 = vmatprep.subr.bf16.mxu0 %v3237_v9  ;;  %2663 = vmatprep.subr.bf16.mxu1 %v3131_v40 }
 0x367   :  { %v863_v44 = vpop.f32.mrb[4].mxu0  ;;  %v934_v48 = vpop.f32.mrb[12].mxu1 }
 0x368   :  { %v2859_v50 = vadd.f32 %v863_v44, %v3386_v5  ;;  %v865_v53 = vpop.f32.mrb[5].mxu0  ;;  %v2167_v57 = vpop.f32.mrb[13].mxu1  ;;  %v952_v6 = vadd.f32 %v3395_v31, %v934_v48 }
 0x369   :  { %v2860_v62 = vadd.f32 %v865_v53, %v3388_v7 }
 0x36a   :  { %v1847_v59 = vmul.f32 -1.442695, %v2859_v50 }
 0x36b   :  { %v1848_v29 = vmul.f32 -1.442695, %v2860_v62 }
 0x36c   :  { %2920 = vpow2.f32 %v1847_v59 }
 0x36d   :  { %2922 = vpow2.f32 %v1848_v29 }
 0x376   :  { %v2921_v42 = vpop.eup %2920 }
 0x377   :  { %v942_v47 = vadd.f32 1.0, %v2921_v42  ;;  %v2923_v1 = vpop.eup %2922 }
 0x378   :  { %v949_v3 = vadd.f32 1.0, %v2923_v1 }
 0x379   :  { %2924 = vrcp.f32 %v942_v47 }
 0x37a   :  { %2926 = vrcp.f32 %v949_v3 }
 0x383   :  { %v2925_v8 = vpop.eup %2924 }
 0x384   :  { %v953_v11 = vmul.f32 %v2925_v8, %v952_v6  ;;  %v2927_v14 = vpop.eup %2926 }
 0x385   :  { %v956_v16 = vsub.f32 1.0, %v2927_v14  ;;  %v958_v22 = vmul.f32 %v2927_v14, %v3444_v43 }
 0x386   :  { %v954_v12 = vadd.f32 %v953_v11, %v3376_v52 }
 0x388   :  { %2928 = vtanh.f32 %v954_v12 }
 0x392   :  { %v2929_v19 = vpop.eup %2928 }
 0x393   :  { %v957_v21 = vmul.f32 %v2929_v19, %v956_v16 }
 0x395   :  { %v3489_v27 = vadd.f32 %v958_v22, %v957_v21 }
 0x397   :  { %961 = vst [vmem:[#allocation12 + $0x10] sm:$0xff] %v3489_v27  ;;  %1031 = vmatmul.mubr.f32.vlgmr.msra.gmra.mrb[6].mxu0 %v3489_v27  ;;  %2201 = vmatmul.mubr.f32.vlgmr.msra.gmra.mrb[14].mxu1 %v3489_v27 }
 0x398   :  { %2634 = vmatpush1.bf16.msra.mxu0 %v3239_v17  ;;  %2665 = vmatpush3.bf16.msra.mxu1 %v3260_v41 }
 0x399   :  { %2636 = vmatprep.subr.bf16.mxu0 %v3242_v18  ;;  %2666 = vmatprep.subr.bf16.mxu1 %v3131_v40 }
 0x39a   :  { %1199 = vmatprep.mubr.f32.mxu0 %v3130_v0  ;;  %2235 = vmatprep.mubr.msk.f32.mxu1 %vm3132_vm0, %v3130_v0 }
 0x39c   :  { %2638 = vmatpush1.bf16.msra.mxu0 %v3247_v25  ;;  %2668 = vmatpush3.bf16.msra.mxu1 %v3270_v51 }
 0x39d   :  { %2640 = vmatprep.subr.bf16.mxu0 %v3250_v26  ;;  %2669 = vmatprep.subr.bf16.mxu1 %v3131_v40 }
 0x3a0   :  { %2642 = vmatpush1.bf16.msra.mxu0 %v3254_v34  ;;  %2671 = vmatpush3.bf16.msra.mxu1 %v3281_v61 }
 0x3a1   :  { %2644 = vmatprep.subr.bf16.mxu0 %v3257_v35  ;;  %2672 = vmatprep.subr.bf16.mxu1 %v3131_v40 }
 0x3a4   :  { %2646 = vmatpush1.bf16.msra.mxu0 %v3264_v45  ;;  %2674 = vmatpush3.bf16.msra.mxu1 %v3292_v10 }
 0x3a5   :  { %2648 = vmatprep.subr.bf16.mxu0 %v3267_v46  ;;  %2675 = vmatprep.subr.bf16.mxu1 %v3131_v40 }
 0x3a8   :  { %2650 = vmatpush1.bf16.msra.mxu0 %v3275_v55  ;;  %2677 = vmatpush3.bf16.msra.mxu1 %v3303_v20 }
 0x3a9   :  { %2652 = vmatprep.subr.bf16.mxu0 %v3278_v56  ;;  %2678 = vmatprep.subr.bf16.mxu1 %v3131_v40 }
 0x3ac   :  { %2654 = vmatpush1.bf16.msra.mxu0 %v3286_v2  ;;  %2680 = vmatpush3.bf16.msra.mxu1 %v3314_v24 }
 0x3ad   :  { %2656 = vmatprep.subr.bf16.mxu0 %v3289_v4  ;;  %2681 = vmatprep.subr.bf16.mxu1 %v3131_v40 }
 0x3b0   :  { %2658 = vmatpush1.bf16.msra.mxu0 %v3297_v13  ;;  %2683 = vmatpush3.bf16.msra.mxu1 %v3323_v30 }
 0x3b1   :  { %2660 = vmatprep.subr.bf16.mxu0 %v3300_v15  ;;  %2684 = vmatprep.subr.bf16.mxu1 %v3131_v40 }
 0x3b4   :  { %2662 = vmatpush1.bf16.msra.mxu0 %v3310_v23  ;;  %2686 = vmatpush3.bf16.msra.mxu1 %v3331_v33 }
 0x3b5   :  { %2688 = vmatprep.subr.bf16.mxu0 %v3237_v9  ;;  %2719 = vmatprep.subr.bf16.mxu1 %v3131_v40 }
 0x46a   :  { %v1032_v52 = vpop.f32.mrb[6].mxu0  ;;  %v1103_v28 = vpop.f32.mrb[14].mxu1 }
 0x46b   :  { %v2861_v32 = vadd.f32 %v1032_v52, %v3386_v5  ;;  %v1034_v36 = vpop.f32.mrb[7].mxu0  ;;  %v2202_v37 = vpop.f32.mrb[15].mxu1  ;;  %v1121_v57 = vadd.f32 %v3395_v31, %v1103_v28 }
 0x46c   :  { %v2862_v39 = vadd.f32 %v1034_v36, %v3388_v7 }
 0x46d   :  { %v1849_v38 = vmul.f32 -1.442695, %v2861_v32 }
 0x46e   :  { %v1850_v43 = vmul.f32 -1.442695, %v2862_v39 }
 0x46f   :  { %2930 = vpow2.f32 %v1849_v38 }
 0x470   :  { %2932 = vpow2.f32 %v1850_v43 }
 0x479   :  { %v2931_v44 = vpop.eup %2930 }
 0x47a   :  { %v1111_v48 = vadd.f32 1.0, %v2931_v44  ;;  %v2933_v50 = vpop.eup %2932 }
 0x47b   :  { %v1118_v53 = vadd.f32 1.0, %v2933_v50 }
 0x47c   :  { %2934 = vrcp.f32 %v1111_v48 }
 0x47d   :  { %2936 = vrcp.f32 %v1118_v53 }
 0x486   :  { %v2935_v59 = vpop.eup %2934 }
 0x487   :  { %v1122_v62 = vmul.f32 %v2935_v59, %v1121_v57  ;;  %v2937_v42 = vpop.eup %2936 }
 0x488   :  { %v1125_v47 = vsub.f32 1.0, %v2937_v42  ;;  %v1127_v6 = vmul.f32 %v2937_v42, %v3489_v27 }
 0x489   :  { %v1123_v29 = vadd.f32 %v1122_v62, %v3374_v49 }
 0x48b   :  { %2938 = vtanh.f32 %v1123_v29 }
 0x495   :  { %v2939_v1 = vpop.eup %2938 }
 0x496   :  { %v1126_v3 = vmul.f32 %v2939_v1, %v1125_v47 }
 0x498   :  { %v3534_v8 = vadd.f32 %v1127_v6, %v1126_v3 }
 0x49a   :  { %1130 = vst [vmem:[#allocation12 + $0x18] sm:$0xff] %v3534_v8  ;;  %1200 = vmatmul.mubr.f32.vlgmr.msra.gmra.mrb[8].mxu0 %v3534_v8  ;;  %2236 = vmatmul.mubr.f32.vlgmr.msra.gmra.mrb[16].mxu1 %v3534_v8 }
 0x49b   :  { %2690 = vmatpush1.bf16.msra.mxu0 %v3239_v17  ;;  %2721 = vmatpush3.bf16.msra.mxu1 %v3260_v41 }
 0x49c   :  { %2692 = vmatprep.subr.bf16.mxu0 %v3242_v18  ;;  %2722 = vmatprep.subr.bf16.mxu1 %v3131_v40 }
 0x49d   :  { %1368 = vmatprep.mubr.f32.mxu0 %v3130_v0  ;;  %2270 = vmatprep.mubr.msk.f32.mxu1 %vm3132_vm0, %v3130_v0 }
 0x49f   :  { %2694 = vmatpush1.bf16.msra.mxu0 %v3247_v25  ;;  %2724 = vmatpush3.bf16.msra.mxu1 %v3270_v51 }
 0x4a0   :  { %2696 = vmatprep.subr.bf16.mxu0 %v3250_v26  ;;  %2725 = vmatprep.subr.bf16.mxu1 %v3131_v40 }
 0x4a3   :  { %2698 = vmatpush1.bf16.msra.mxu0 %v3254_v34  ;;  %2727 = vmatpush3.bf16.msra.mxu1 %v3281_v61 }
 0x4a4   :  { %2700 = vmatprep.subr.bf16.mxu0 %v3257_v35  ;;  %2728 = vmatprep.subr.bf16.mxu1 %v3131_v40 }
 0x4a7   :  { %2702 = vmatpush1.bf16.msra.mxu0 %v3264_v45  ;;  %2730 = vmatpush3.bf16.msra.mxu1 %v3292_v10 }
 0x4a8   :  { %2704 = vmatprep.subr.bf16.mxu0 %v3267_v46  ;;  %2731 = vmatprep.subr.bf16.mxu1 %v3131_v40 }
 0x4ab   :  { %2706 = vmatpush1.bf16.msra.mxu0 %v3275_v55  ;;  %2733 = vmatpush3.bf16.msra.mxu1 %v3303_v20 }
 0x4ac   :  { %2708 = vmatprep.subr.bf16.mxu0 %v3278_v56  ;;  %2734 = vmatprep.subr.bf16.mxu1 %v3131_v40 }
 0x4af   :  { %2710 = vmatpush1.bf16.msra.mxu0 %v3286_v2  ;;  %2736 = vmatpush3.bf16.msra.mxu1 %v3314_v24 }
 0x4b0   :  { %2712 = vmatprep.subr.bf16.mxu0 %v3289_v4  ;;  %2737 = vmatprep.subr.bf16.mxu1 %v3131_v40 }
 0x4b3   :  { %2714 = vmatpush1.bf16.msra.mxu0 %v3297_v13  ;;  %2739 = vmatpush3.bf16.msra.mxu1 %v3323_v30 }
 0x4b4   :  { %2716 = vmatprep.subr.bf16.mxu0 %v3300_v15  ;;  %2740 = vmatprep.subr.bf16.mxu1 %v3131_v40 }
 0x4b7   :  { %2718 = vmatpush1.bf16.msra.mxu0 %v3310_v23  ;;  %2742 = vmatpush3.bf16.msra.mxu1 %v3331_v33 }
 0x4b8   :  { %2744 = vmatprep.subr.bf16.mxu0 %v3237_v9  ;;  %2775 = vmatprep.subr.bf16.mxu1 %v3131_v40 }
 0x56d   :  { %v1201_v49 = vpop.f32.mrb[8].mxu0  ;;  %v1272_v11 = vpop.f32.mrb[16].mxu1 }
 0x56e   :  { %v2863_v12 = vadd.f32 %v1201_v49, %v3386_v5  ;;  %v1203_v14 = vpop.f32.mrb[9].mxu0  ;;  %v2237_v16 = vpop.f32.mrb[17].mxu1  ;;  %v1290_v36 = vadd.f32 %v3395_v31, %v1272_v11 }
 0x56f   :  { %v2864_v21 = vadd.f32 %v1203_v14, %v3388_v7 }
 0x570   :  { %v1851_v19 = vmul.f32 -1.442695, %v2863_v12 }
 0x571   :  { %v1852_v22 = vmul.f32 -1.442695, %v2864_v21 }
 0x572   :  { %2940 = vpow2.f32 %v1851_v19 }
 0x573   :  { %2942 = vpow2.f32 %v1852_v22 }
 0x57c   :  { %v2941_v27 = vpop.eup %2940 }
 0x57d   :  { %v1280_v52 = vadd.f32 1.0, %v2941_v27  ;;  %v2943_v28 = vpop.eup %2942 }
 0x57e   :  { %v1287_v32 = vadd.f32 1.0, %v2943_v28 }
 0x57f   :  { %2944 = vrcp.f32 %v1280_v52 }
 0x580   :  { %2946 = vrcp.f32 %v1287_v32 }
 0x589   :  { %v2945_v37 = vpop.eup %2944 }
 0x58a   :  { %v1291_v38 = vmul.f32 %v2945_v37, %v1290_v36  ;;  %v2947_v43 = vpop.eup %2946 }
 0x58b   :  { %v1294_v44 = vsub.f32 1.0, %v2947_v43  ;;  %v1296_v53 = vmul.f32 %v2947_v43, %v3534_v8 }
 0x58c   :  { %v1292_v39 = vadd.f32 %v1291_v38, %v3380_v58 }
 0x58e   :  { %2948 = vtanh.f32 %v1292_v39 }
 0x598   :  { %v2949_v48 = vpop.eup %2948 }
 0x599   :  { %v1295_v50 = vmul.f32 %v2949_v48, %v1294_v44 }
 0x59b   :  { %v3579_v57 = vadd.f32 %v1296_v53, %v1295_v50 }
 0x59d   :  { %1299 = vst [vmem:[#allocation12 + $0x20] sm:$0xff] %v3579_v57  ;;  %1369 = vmatmul.mubr.f32.vlgmr.msra.gmra.mrb[10].mxu0 %v3579_v57  ;;  %2271 = vmatmul.mubr.f32.vlgmr.msra.gmra.mrb[18].mxu1 %v3579_v57 }
 0x59e   :  { %2746 = vmatpush1.bf16.msra.mxu0 %v3239_v17  ;;  %2777 = vmatpush3.bf16.msra.mxu1 %v3260_v41 }
 0x59f   :  { %2748 = vmatprep.subr.bf16.mxu0 %v3242_v18  ;;  %2778 = vmatprep.subr.bf16.mxu1 %v3131_v40 }
 0x5a0   :  { %1537 = vmatprep.mubr.f32.mxu0 %v3130_v0  ;;  %2305 = vmatprep.mubr.msk.f32.mxu1 %vm3132_vm0, %v3130_v0 }
 0x5a2   :  { %2750 = vmatpush1.bf16.msra.mxu0 %v3247_v25  ;;  %2780 = vmatpush3.bf16.msra.mxu1 %v3270_v51 }
 0x5a3   :  { %2752 = vmatprep.subr.bf16.mxu0 %v3250_v26  ;;  %2781 = vmatprep.subr.bf16.mxu1 %v3131_v40 }
 0x5a6   :  { %2754 = vmatpush1.bf16.msra.mxu0 %v3254_v34  ;;  %2783 = vmatpush3.bf16.msra.mxu1 %v3281_v61 }
 0x5a7   :  { %2756 = vmatprep.subr.bf16.mxu0 %v3257_v35  ;;  %2784 = vmatprep.subr.bf16.mxu1 %v3131_v40 }
 0x5aa   :  { %2758 = vmatpush1.bf16.msra.mxu0 %v3264_v45  ;;  %2786 = vmatpush3.bf16.msra.mxu1 %v3292_v10 }
 0x5ab   :  { %2760 = vmatprep.subr.bf16.mxu0 %v3267_v46  ;;  %2787 = vmatprep.subr.bf16.mxu1 %v3131_v40 }
 0x5ae   :  { %2762 = vmatpush1.bf16.msra.mxu0 %v3275_v55  ;;  %2789 = vmatpush3.bf16.msra.mxu1 %v3303_v20 }
 0x5af   :  { %2764 = vmatprep.subr.bf16.mxu0 %v3278_v56  ;;  %2790 = vmatprep.subr.bf16.mxu1 %v3131_v40 }
 0x5b2   :  { %2766 = vmatpush1.bf16.msra.mxu0 %v3286_v2  ;;  %2792 = vmatpush3.bf16.msra.mxu1 %v3314_v24 }
 0x5b3   :  { %2768 = vmatprep.subr.bf16.mxu0 %v3289_v4  ;;  %2793 = vmatprep.subr.bf16.mxu1 %v3131_v40 }
 0x5b6   :  { %2770 = vmatpush1.bf16.msra.mxu0 %v3297_v13  ;;  %2795 = vmatpush3.bf16.msra.mxu1 %v3323_v30 }
 0x5b7   :  { %2772 = vmatprep.subr.bf16.mxu0 %v3300_v15  ;;  %2796 = vmatprep.subr.bf16.mxu1 %v3131_v40 }
 0x5ba   :  { %2774 = vmatpush1.bf16.msra.mxu0 %v3310_v23  ;;  %2798 = vmatpush3.bf16.msra.mxu1 %v3331_v33 }
 0x5bb   :  { %2800 = vmatprep.subr.bf16.mxu0 %v3237_v9  ;;  %2831 = vmatprep.subr.bf16.mxu1 %v3131_v40 }
 0x670   :  { %v1370_v58 = vpop.f32.mrb[10].mxu0  ;;  %v1441_v59 = vpop.f32.mrb[18].mxu1 }
 0x671   :  { %v2865_v62 = vadd.f32 %v1370_v58, %v3386_v5  ;;  %v1372_v29 = vpop.f32.mrb[11].mxu0  ;;  %v2272_v42 = vpop.f32.mrb[19].mxu1  ;;  %v1459_v9 = vadd.f32 %v3395_v31, %v1441_v59 }
 0x672   :  { %v2866_v1 = vadd.f32 %v1372_v29, %v3388_v7 }
 0x673   :  { %v1853_v47 = vmul.f32 -1.442695, %v2865_v62 }
 0x674   :  { %v1854_v3 = vmul.f32 -1.442695, %v2866_v1 }
 0x675   :  { %2950 = vpow2.f32 %v1853_v47 }
 0x676   :  { %2952 = vpow2.f32 %v1854_v3 }
 0x67f   :  { %v2951_v6 = vpop.eup %2950 }
 0x680   :  { %v1449_v8 = vadd.f32 1.0, %v2951_v6  ;;  %v2953_v49 = vpop.eup %2952 }
 0x681   :  { %v1456_v11 = vadd.f32 1.0, %v2953_v49 }
 0x682   :  { %2954 = vrcp.f32 %v1449_v8 }
 0x683   :  { %2956 = vrcp.f32 %v1456_v11 }
 0x68c   :  { %v2955_v12 = vpop.eup %2954 }
 0x68d   :  { %v1460_v14 = vmul.f32 %v2955_v12, %v1459_v9  ;;  %v2957_v19 = vpop.eup %2956 }
 0x68e   :  { %v1463_v21 = vsub.f32 1.0, %v2957_v19  ;;  %v1465_v52 = vmul.f32 %v2957_v19, %v3579_v57 }
 0x68f   :  { %v1461_v16 = vadd.f32 %v1460_v14, %v3378_v54 }
 0x691   :  { %2958 = vtanh.f32 %v1461_v16 }
 0x69b   :  { %v2959_v22 = vpop.eup %2958 }
 0x69c   :  { %v1464_v27 = vmul.f32 %v2959_v22, %v1463_v21 }
 0x69e   :  { %v1466_v28 = vadd.f32 %v1465_v52, %v1464_v27 }
 0x6a0   :  { %1468 = vst [vmem:[#allocation12 + $0x28] sm:$0xff] %v1466_v28  ;;  %1538 = vmatmul.mubr.f32.vlgmr.msra.gmra.mrb[12].mxu0 %v1466_v28  ;;  %2306 = vmatmul.mubr.f32.vlgmr.msra.gmra.mrb[20].mxu1 %v1466_v28 }
 0x6a1   :  { %2802 = vmatpush1.bf16.msra.mxu0 %v3239_v17  ;;  %2833 = vmatpush3.bf16.msra.mxu1 %v3260_v41 }
 0x6a2   :  { %2804 = vmatprep.subr.bf16.mxu0 %v3242_v18  ;;  %2834 = vmatprep.subr.bf16.mxu1 %v3131_v40 }
 0x6a3   :  { %1706 = vmatprep.mubr.f32.mxu0 %v3130_v0  ;;  %2340 = vmatprep.mubr.msk.f32.mxu1 %vm3132_vm0, %v3130_v0 }
 0x6a5   :  { %2806 = vmatpush1.bf16.msra.mxu0 %v3247_v25  ;;  %2836 = vmatpush3.bf16.msra.mxu1 %v3270_v51 }
 0x6a6   :  { %2808 = vmatprep.subr.bf16.mxu0 %v3250_v26  ;;  %2837 = vmatprep.subr.bf16.mxu1 %v3131_v40 }
 0x6a9   :  { %2810 = vmatpush1.bf16.msra.mxu0 %v3254_v34  ;;  %2839 = vmatpush3.bf16.msra.mxu1 %v3281_v61 }
 0x6aa   :  { %2812 = vmatprep.subr.bf16.mxu0 %v3257_v35  ;;  %2840 = vmatprep.subr.bf16.mxu1 %v3131_v40 }
 0x6ad   :  { %2814 = vmatpush1.bf16.msra.mxu0 %v3264_v45  ;;  %2842 = vmatpush3.bf16.msra.mxu1 %v3292_v10 }
 0x6ae   :  { %2816 = vmatprep.subr.bf16.mxu0 %v3267_v46  ;;  %2843 = vmatprep.subr.bf16.mxu1 %v3131_v40 }
 0x6b1   :  { %2818 = vmatpush1.bf16.msra.mxu0 %v3275_v55  ;;  %2845 = vmatpush3.bf16.msra.mxu1 %v3303_v20 }
 0x6b2   :  { %2820 = vmatprep.subr.bf16.mxu0 %v3278_v56  ;;  %2846 = vmatprep.subr.bf16.mxu1 %v3131_v40 }
 0x6b5   :  { %2822 = vmatpush1.bf16.msra.mxu0 %v3286_v2  ;;  %2848 = vmatpush3.bf16.msra.mxu1 %v3314_v24 }
 0x6b6   :  { %2824 = vmatprep.subr.bf16.mxu0 %v3289_v4  ;;  %2849 = vmatprep.subr.bf16.mxu1 %v3131_v40 }
 0x6b9   :  { %2826 = vmatpush1.bf16.msra.mxu0 %v3297_v13  ;;  %2851 = vmatpush3.bf16.msra.mxu1 %v3323_v30 }
 0x6ba   :  { %2828 = vmatprep.subr.bf16.mxu0 %v3300_v15  ;;  %2852 = vmatprep.subr.bf16.mxu1 %v3131_v40 }
 0x6bd   :  { %2830 = vmatpush1.bf16.msra.mxu0 %v3310_v23  ;;  %2854 = vmatpush3.bf16.msra.mxu1 %v3331_v33 }
 0x773   :  { %v1539_v0 = vpop.f32.mrb[12].mxu0  ;;  %v1610_v17 = vpop.f32.mrb[20].mxu1 }
 0x774   :  { %v2867_v18 = vadd.f32 %v1539_v0, %v3386_v5  ;;  %v1541_v25 = vpop.f32.mrb[13].mxu0  ;;  %v2307_v26 = vpop.f32.mrb[21].mxu1  ;;  %v1628_v55 = vadd.f32 %v3395_v31, %v1610_v17 }
 0x775   :  { %v2868_v35 = vadd.f32 %v1541_v25, %v3388_v7 }
 0x776   :  { %v1855_v34 = vmul.f32 -1.442695, %v2867_v18 }
 0x777   :  { %v1856_v41 = vmul.f32 -1.442695, %v2868_v35 }
 0x778   :  { %2960 = vpow2.f32 %v1855_v34 }
 0x779   :  { %2962 = vpow2.f32 %v1856_v41 }
 0x782   :  { %v2961_v45 = vpop.eup %2960 }
 0x783   :  { %v1618_v46 = vadd.f32 1.0, %v2961_v45  ;;  %v2963_v40 = vpop.eup %2962 }
 0x784   :  { %v1625_v51 = vadd.f32 1.0, %v2963_v40 }
 0x785   :  { %2964 = vrcp.f32 %v1618_v46 }
 0x786   :  { %2966 = vrcp.f32 %v1625_v51 }
 0x78f   :  { %v2965_v56 = vpop.eup %2964 }
 0x790   :  { %v1629_v61 = vmul.f32 %v2965_v56, %v1628_v55  ;;  %v2967_v4 = vpop.eup %2966 }
 0x791   :  { %v1632_v10 = vsub.f32 1.0, %v2967_v4  ;;  %v1634_v20 = vmul.f32 %v2967_v4, %v1466_v28 }
 0x792   :  { %v1630_v2 = vadd.f32 %v1629_v61, %v3384_v63 }
 0x794   :  { %2968 = vtanh.f32 %v1630_v2 }
 0x79e   :  { %v2969_v13 = vpop.eup %2968 }
 0x79f   :  { %v1633_v15 = vmul.f32 %v2969_v13, %v1632_v10 }
 0x7a1   :  { %v1635_v23 = vadd.f32 %v1634_v20, %v1633_v15 }
 0x7a3   :  { %1637 = vst [vmem:[#allocation12 + $0x30] sm:$0xff] %v1635_v23  ;;  %1707 = vmatmul.mubr.f32.vlgmr.msra.gmra.mrb[14].mxu0 %v1635_v23  ;;  %2341 = vmatmul.mubr.f32.vlgmr.msra.gmra.mrb[22].mxu1 %v1635_v23 }
 0x876   :  { %v1708_v24 = vpop.f32.mrb[14].mxu0  ;;  %v1779_v30 = vpop.f32.mrb[22].mxu1 }
 0x877   :  { %v2869_v33 = vadd.f32 %v1708_v24, %v3386_v5  ;;  %v1710_v54 = vpop.f32.mrb[15].mxu0  ;;  %v2342_v32 = vpop.f32.mrb[23].mxu1  ;;  %v1797_v48 = vadd.f32 %v3395_v31, %v1779_v30 }
 0x878   :  { %v2870_v37 = vadd.f32 %v1710_v54, %v3388_v7 }
 0x879   :  { %v1857_v36 = vmul.f32 -1.442695, %v2869_v33 }
 0x87a   :  { %v1858_v63 = vmul.f32 -1.442695, %v2870_v37 }
 0x87b   :  { %2970 = vpow2.f32 %v1857_v36 }
 0x87c   :  { %2972 = vpow2.f32 %v1858_v63 }
 0x885   :  { %v2971_v38 = vpop.eup %2970 }
 0x886   :  { %v1787_v39 = vadd.f32 1.0, %v2971_v38  ;;  %v2973_v43 = vpop.eup %2972 }
 0x887   :  { %v1794_v44 = vadd.f32 1.0, %v2973_v43 }
 0x888   :  { %2974 = vrcp.f32 %v1787_v39 }
 0x889   :  { %2976 = vrcp.f32 %v1794_v44 }
 0x892   :  { %v2975_v50 = vpop.eup %2974 }
 0x893   :  { %v1798_v53 = vmul.f32 %v2975_v50, %v1797_v48  ;;  %v2977_v57 = vpop.eup %2976 }
 0x894   :  { %v1801_v58 = vsub.f32 1.0, %v2977_v57  ;;  %v1803_v62 = vmul.f32 %v2977_v57, %v1635_v23 }
 0x895   :  { %v1799_v5 = vadd.f32 %v1798_v53, %v3382_v60 }
 0x897   :  { %2978 = vtanh.f32 %v1799_v5 }
 0x8a1   :  { %v2979_v59 = vpop.eup %2978 }
 0x8a2   :  { %v1802_v7 = vmul.f32 %v2979_v59, %v1801_v58 }
 0x8a4   :  { %v1804_v29 = vadd.f32 %v1803_v62, %v1802_v7 }
 0x8a6   :  { %1806 = vst [vmem:[#allocation12 + $0x38] sm:$0xff] %v1804_v29  ;;  %1808 = vst [vmem:[#allocation13] sm:$0xff] %v1804_v29 }
 0x8a7   :  { %3079 = shalt.err (!%p3076_p8)
}
 0x8a8   :  { %s3080_s0 = scalar_lea.hbm %s3698_s6, 1024 }
 0x8a9   :  { %p3081_p9 = scmp.ne.s32.totalorder %s3698_s6, %s3080_s0  ;;  %p3084_p10 = scmp.lt.u32.totalorder %s3080_s0, %s3698_s6 }
 0x8ab   :  { %p3086_p11 = pnand %p3084_p10, %p3081_p9 }
 0x8ad   :  { %3089 = shalt.err (!%p3086_p11)
}
 0x8ae   :  { %1820 = dma.vmem_to_hbm [thread:$0]  %s1815_s8, 1024, %s3698_s6, [#allocation6], %s3124_s1, %s3124_s1, %s3125_s23  }
 0x8af   :  { %s3090_s19 = scalar_lea.vmem %s1828_s10, 128  ;;  %p3095_p13 = scmp.lt.s32.totalorder %s1828_s10, %s1828_s10 }
 0x8b0   :  { %p3091_p12 = scmp.ne.s32.totalorder %s1828_s10, %s3090_s19  ;;  %p3096_p0 = scmp.lt.s32.totalorder %s3090_s19, %s3090_s19 }
 0x8b2   :  { %p3097_p1 = por %p3096_p0, %p3095_p13 }
 0x8b4   :  { %p3098_p2 = pnand %p3097_p1, %p3091_p12 }
 0x8b6   :  { %3101 = shalt.err (!%p3098_p2)
}
 0x8b7   :  { %s3102_s22 = scalar_lea.hbm %s3699_s7, 128 }
 0x8b8   :  { %p3103_p3 = scmp.ne.s32.totalorder %s3699_s7, %s3102_s22  ;;  %p3106_p4 = scmp.lt.u32.totalorder %s3102_s22, %s3699_s7 }
 0x8ba   :  { %p3108_p5 = pnand %p3106_p4, %p3103_p3 }
 0x8bc   :  { %3111 = shalt.err (!%p3108_p5)
}
 0x8bd   :  { %1830 = dma.vmem_to_hbm [thread:$0]  %s1828_s10, 128, %s3699_s7, [#allocation14]  }
 0x8be   :  { %3118 = dma.done.wait [#allocation6], 1024  }
 0x8bf   :  { %3119 = vsyncadd [#allocation6], 4294966272 }
 0x8c0   :  { %3120 = dma.done.wait [#allocation14], 128  }
 0x8c1   :  { %3121 = vsyncadd [#allocation14], 4294967168 }
 0x8c2   :  { %1837 = vsyncpa [#allocation5], 1 }
 0x8c3   :  { %1838 = vsyncpa [#allocation8], 1 }
 0x8c4   :  { %1839 = vsyncpa [#allocation11], 1 }
 0x8c5   :  { %1840 = vsyncpa [#allocation6], 1 }
 0x8c6   :  { %1841 = vsyncpa [#allocation14], 1 }

</bundles_post_ra>
